<compile_context>
chip_gen: v6e
topology: v6e:2x2x1
jax: 0.10.0
libtpu: 0.0.40
codegen_flags: <defaults>
</compile_context>

<pallas_src>
import functools

import jax
import jax.numpy as jnp
from jax.experimental import pallas as pl
from jax.experimental.pallas import tpu as pltpu


def mil_attention_kernel(x_ref,
                         w1_ref, b1_ref,
                         wab_ref, bab_ref,
                         wc_ref, bc_ref,
                         wr_ref, br_ref,
                         wcls_ref, bcls_ref,
                         out_ref, *, B, N, D2):
    # x: (B*N, L) f32 -- all instance rows of all bags processed as one fused slab.
    x = x_ref[...]
    D1 = w1_ref.shape[1]

    # h = relu(x @ W1 + b1)   (bf16 MXU inputs, f32 accumulation, f32 elementwise)
    h = jnp.maximum(
        jnp.dot(x.astype(jnp.bfloat16), w1_ref[...],
                preferred_element_type=jnp.float32) + b1_ref[...], 0.0)       # (B*N, D1)

    # Fused gated-attention projection: [a | b] = h @ [Wa | Wb] + [ba | bb]
    # D2 is a multiple of 128, so the lane split below is copy-free.
    ab = jnp.dot(h.astype(jnp.bfloat16), wab_ref[...],
                 preferred_element_type=jnp.float32) + bab_ref[...]           # (B*N, 2*D2)
    gated = jnp.tanh(ab[:, :D2]) * jax.nn.sigmoid(ab[:, D2:])                 # (B*N, D2)

    # Linear(D2 -> 1): lane reduction against the single weight row (f32).
    scores = jnp.sum(gated * wc_ref[...], axis=-1, keepdims=True) + bc_ref[...]  # (B*N, 1)

    # softmax over dim 0 (the batch of bags), per instance index n.
    # Leading-dim split only (layout-compatible reshape, no relayout copy), then axis-0
    # reductions -- replaces the old unrolled slice/concatenate bookkeeping.
    s = scores.reshape(B, N, 1)                                               # (B, N, 1)
    m = jnp.max(s, axis=0, keepdims=True)                                     # (1, N, 1)
    e = jnp.exp(s - m)                                                        # (B, N, 1)
    attn = e / jnp.sum(e, axis=0, keepdims=True)                              # (B, N, 1)

    # pooled[b, :] = sum_n attn[b, n] * h[b, n, :]
    # Exact f32: broadcast multiply (VPU) + sublane-axis sum (XLU). No MXU / no precision loss.
    h3 = h.reshape(B, N, D1)                                                  # leading-dim split
    pooled = jnp.sum(attn * h3, axis=1)                                       # (B, D1)

    # rho + classifier
    r = jnp.maximum(
        jnp.dot(pooled.astype(jnp.bfloat16), wr_ref[...],
                preferred_element_type=jnp.float32) + br_ref[...], 0.0)       # (B, D2)
    logits = jnp.dot(r.astype(jnp.bfloat16), wcls_ref[...],
                     preferred_element_type=jnp.float32) + bcls_ref[...]      # (B, C)
    out_ref[...] = logits.astype(out_ref.dtype)


def prepare_params(p):
    """One-time packing: fuse Wa|Wb (and their biases), store matmul weights as bf16.

    Biases, Wc and bc stay f32 (they feed elementwise / lane-reduction math only)."""
    return {
        "w1":   p["w1"].astype(jnp.bfloat16),
        "b1":   p["b1"],
        "wab":  jnp.concatenate([p["wa"], p["wb"]], axis=1).astype(jnp.bfloat16),
        "bab":  jnp.concatenate([p["ba"], p["bb"]], axis=1),
        "wc":   p["wc"],
        "bc":   p["bc"],
        "wr":   p["wr"].astype(jnp.bfloat16),
        "br":   p["br"],
        "wcls": p["wcls"].astype(jnp.bfloat16),
        "bcls": p["bcls"],
    }


def mil_attention_forward(x, pp):
    """x: (B, N, L) float32, pp: output of prepare_params. Returns logits (B, n_classes)."""
    B, N, L = x.shape
    D1 = pp["w1"].shape[1]
    D2 = pp["wc"].shape[1]
    C = pp["wcls"].shape[1]
    # The fused a|b projection is split on a lane boundary inside the kernel; keep it copy-free.
    assert D2 % 128 == 0, "D2 must be a multiple of 128 so the a|b lane split is copy-free"

    x2d = x.reshape(B * N, L)
    args = (x2d,
            pp["w1"], pp["b1"],
            pp["wab"], pp["bab"],
            pp["wc"], pp["bc"],
            pp["wr"], pp["br"],
            pp["wcls"], pp["bcls"])

    flops = (2 * B * N * L * D1           # h
             + 2 * B * N * D1 * (2 * D2)  # fused a|b projection
             + 2 * B * N * D2             # score lane reduction
             + 2 * B * N * D1             # attention pooling (multiply + sum)
             + 2 * B * D1 * D2            # rho
             + 2 * B * D2 * C)            # classifier
    transcendentals = B * N * (2 * D2 + 1)          # tanh + sigmoid + softmax exp
    bytes_accessed = sum(int(a.size) * a.dtype.itemsize for a in args) + B * C * 4

    kernel = functools.partial(mil_attention_kernel, B=B, N=N, D2=D2)
    return pl.pallas_call(
        kernel,
        out_shape=jax.ShapeDtypeStruct((B, C), jnp.float32),
        in_specs=[pl.BlockSpec(memory_space=pltpu.MemorySpace.VMEM)] * len(args),
        out_specs=pl.BlockSpec(memory_space=pltpu.MemorySpace.VMEM),
        cost_estimate=pl.CostEstimate(flops=flops,
                                      transcendentals=transcendentals,
                                      bytes_accessed=bytes_accessed),
    )(*args)


def init_params(key, L, D1, D2, n_classes):
    """Deterministic synthetic parameters with the same shapes as the PyTorch module
    (stored transposed: (in, out) for weights, (1, out) for biases)."""
    ks = jax.random.split(key, 12)
    s = 0.05
    return {
        "w1":   s * jax.random.normal(ks[0],  (L,  D1), jnp.float32),
        "b1":   s * jax.random.normal(ks[1],  (1,  D1), jnp.float32),
        "wa":   s * jax.random.normal(ks[2],  (D1, D2), jnp.float32),
        "ba":   s * jax.random.normal(ks[3],  (1,  D2), jnp.float32),
        "wb":   s * jax.random.normal(ks[4],  (D1, D2), jnp.float32),
        "bb":   s * jax.random.normal(ks[5],  (1,  D2), jnp.float32),
        "wc":   s * jax.random.normal(ks[6],  (1,  D2), jnp.float32),   # Linear(D2, 1).weight
        "bc":   s * jax.random.normal(ks[7],  (1,  1),  jnp.float32),
        "wr":   s * jax.random.normal(ks[8],  (D1, D2), jnp.float32),
        "br":   s * jax.random.normal(ks[9],  (1,  D2), jnp.float32),
        "wcls": s * jax.random.normal(ks[10], (D2, n_classes), jnp.float32),
        "bcls": s * jax.random.normal(ks[11], (1,  n_classes), jnp.float32),
    }


def reference_forward_f32(x, p):
    """Pure-JAX f32 reference matching the PyTorch forward (eval mode)."""
    h = jax.nn.relu(x @ p["w1"] + p["b1"][0])                 # (B, N, D1)
    a = jnp.tanh(h @ p["wa"] + p["ba"][0])
    b = jax.nn.sigmoid(h @ p["wb"] + p["bb"][0])
    A = (a * b) @ p["wc"].T + p["bc"][0]                      # (B, N, 1)
    A = jax.nn.softmax(A, axis=0)                             # softmax over dim 0 (batch)
    pooled = (A * h).sum(axis=1)                              # (B, D1)
    r = jax.nn.relu(pooled @ p["wr"] + p["br"][0])            # (B, D2)
    return r @ p["wcls"] + p["bcls"][0]                       # (B, C)


def reference_forward_mixed(x, pp):
    """Pure-JAX reference mirroring the kernel's mixed-precision policy exactly."""
    B, N, L = x.shape
    D2 = pp["wc"].shape[1]
    x2 = x.reshape(B * N, L)
    h = jax.nn.relu(jnp.dot(x2.astype(jnp.bfloat16), pp["w1"],
                            preferred_element_type=jnp.float32) + pp["b1"])
    ab = jnp.dot(h.astype(jnp.bfloat16), pp["wab"],
                 preferred_element_type=jnp.float32) + pp["bab"]
    gated = jnp.tanh(ab[:, :D2]) * jax.nn.sigmoid(ab[:, D2:])
    s = (jnp.sum(gated * pp["wc"], axis=-1, keepdims=True) + pp["bc"]).reshape(B, N, 1)
    A = jax.nn.softmax(s, axis=0)
    pooled = (A * h.reshape(B, N, -1)).sum(axis=1)
    r = jax.nn.relu(jnp.dot(pooled.astype(jnp.bfloat16), pp["wr"],
                            preferred_element_type=jnp.float32) + pp["br"])
    return jnp.dot(r.astype(jnp.bfloat16), pp["wcls"],
                   preferred_element_type=jnp.float32) + pp["bcls"]


if __name__ == "__main__":
    # Small shapes: input_dim = (N, L) = (8, 64) -> size = [64, 512, 256], batch B = 2, 4 classes.
    B, N, L = 2, 8, 64
    D1, D2 = 512, 256
    n_classes = 4

    key = jax.random.PRNGKey(0)
    kx, kp = jax.random.split(key)
    x = jax.random.normal(kx, (B, N, L), jnp.float32)
    params = init_params(kp, L, D1, D2, n_classes)
    prepped = prepare_params(params)

    fwd = jax.jit(mil_attention_forward)
    logits = jax.block_until_ready(fwd(x, prepped))

    assert logits.shape == (B, n_classes), logits.shape

    # Structural correctness: tight match against a pure-JAX mirror of the same mixed precision.
    mixed_ref = reference_forward_mixed(x, prepped)
    assert jnp.allclose(logits, mixed_ref, atol=5e-3, rtol=5e-3), (
        "kernel/mixed-precision-reference mismatch", logits, mixed_ref)

    # Semantic fidelity: looser match against the full-f32 PyTorch-equivalent reference
    # (slack covers the bf16 weight/MXU-input quantization).
    f32_ref = reference_forward_f32(x, params)
    assert jnp.allclose(logits, f32_ref, atol=3e-2, rtol=3e-2), (
        "kernel/f32-reference mismatch", logits, f32_ref)

    print("KERNEL_OK")
</pallas_src>

<mosaic_0001>
module attributes {stable_mosaic.version = 11 : i64} {
  func.func @mil_attention_kernel(%arg0: memref<16x64xf32, #tpu.memory_space<vmem>>, %arg1: memref<64x512xbf16, #tpu.memory_space<vmem>>, %arg2: memref<1x512xf32, #tpu.memory_space<vmem>>, %arg3: memref<512x512xbf16, #tpu.memory_space<vmem>>, %arg4: memref<1x512xf32, #tpu.memory_space<vmem>>, %arg5: memref<1x256xf32, #tpu.memory_space<vmem>>, %arg6: memref<1x1xf32, #tpu.memory_space<vmem>>, %arg7: memref<512x256xbf16, #tpu.memory_space<vmem>>, %arg8: memref<1x256xf32, #tpu.memory_space<vmem>>, %arg9: memref<256x4xbf16, #tpu.memory_space<vmem>>, %arg10: memref<1x4xf32, #tpu.memory_space<vmem>>, %arg11: memref<2x4xf32, #tpu.memory_space<vmem>>) attributes {dimension_semantics = [], scalar_prefetch = 0 : i64, scratch_operands = 0 : i64, tpu.core_type = #tpu.core_type<tc>} {
    %c0 = arith.constant 0 : index
    %c0_0 = arith.constant 0 : index
    %0 = vector.load %arg0[%c0, %c0_0] : memref<16x64xf32, #tpu.memory_space<vmem>>, vector<16x64xf32>
    %1 = arith.truncf %0 : vector<16x64xf32> to vector<16x64xbf16>
    %c0_1 = arith.constant 0 : index
    %c0_2 = arith.constant 0 : index
    %2 = vector.load %arg1[%c0_1, %c0_2] : memref<64x512xbf16, #tpu.memory_space<vmem>>, vector<64x512xbf16>
    %cst = arith.constant dense<0.000000e+00> : vector<16x512xf32>
    %3 = tpu.matmul %1, %2, %cst {dimension_numbers = #tpu.dot_dimension_numbers<[1], [0], [0], [1], [0, 0, 1, 1], [], []>} : vector<16x64xbf16>, vector<64x512xbf16>, vector<16x512xf32> -> vector<16x512xf32>
    %c0_3 = arith.constant 0 : index
    %c0_4 = arith.constant 0 : index
    %4 = vector.load %arg2[%c0_3, %c0_4] : memref<1x512xf32, #tpu.memory_space<vmem>>, vector<1x512xf32>
    %5 = vector.broadcast %4 : vector<1x512xf32> to vector<16x512xf32>
    %6 = arith.addf %3, %5 : vector<16x512xf32>
    %cst_5 = arith.constant 0.000000e+00 : f32
    %7 = vector.broadcast %cst_5 : f32 to vector<16x512xf32>
    %8 = arith.maximumf %6, %7 : vector<16x512xf32>
    %9 = arith.truncf %8 : vector<16x512xf32> to vector<16x512xbf16>
    %c0_6 = arith.constant 0 : index
    %c0_7 = arith.constant 0 : index
    %10 = vector.load %arg3[%c0_6, %c0_7] : memref<512x512xbf16, #tpu.memory_space<vmem>>, vector<512x512xbf16>
    %cst_8 = arith.constant dense<0.000000e+00> : vector<16x512xf32>
    %11 = tpu.matmul %9, %10, %cst_8 {dimension_numbers = #tpu.dot_dimension_numbers<[1], [0], [0], [1], [0, 0, 1, 1], [], []>} : vector<16x512xbf16>, vector<512x512xbf16>, vector<16x512xf32> -> vector<16x512xf32>
    %c0_9 = arith.constant 0 : index
    %c0_10 = arith.constant 0 : index
    %12 = vector.load %arg4[%c0_9, %c0_10] : memref<1x512xf32, #tpu.memory_space<vmem>>, vector<1x512xf32>
    %13 = vector.broadcast %12 : vector<1x512xf32> to vector<16x512xf32>
    %14 = arith.addf %11, %13 : vector<16x512xf32>
    %15 = vector.extract_strided_slice %14 {offsets = [0, 0], sizes = [16, 256], strides = [1, 1]} : vector<16x512xf32> to vector<16x256xf32>
    %16 = math.tanh %15 : vector<16x256xf32>
    %17 = vector.extract_strided_slice %14 {offsets = [0, 256], sizes = [16, 256], strides = [1, 1]} : vector<16x512xf32> to vector<16x256xf32>
    %18 = arith.negf %17 : vector<16x256xf32>
    %19 = math.exp %18 : vector<16x256xf32>
    %cst_11 = arith.constant 1.000000e+00 : f32
    %20 = vector.broadcast %cst_11 : f32 to vector<16x256xf32>
    %21 = arith.addf %20, %19 : vector<16x256xf32>
    %22 = arith.divf %20, %21 : vector<16x256xf32>
    %23 = arith.mulf %16, %22 : vector<16x256xf32>
    %c0_12 = arith.constant 0 : index
    %c0_13 = arith.constant 0 : index
    %24 = vector.load %arg5[%c0_12, %c0_13] : memref<1x256xf32, #tpu.memory_space<vmem>>, vector<1x256xf32>
    %25 = vector.broadcast %24 : vector<1x256xf32> to vector<16x256xf32>
    %26 = arith.mulf %23, %25 : vector<16x256xf32>
    %cst_14 = arith.constant dense<0.000000e+00> : vector<16xf32>
    %27 = vector.multi_reduction <add>, %26, %cst_14 [1] : vector<16x256xf32> to vector<16xf32>
    %28 = vector.shape_cast %27 : vector<16xf32> to vector<16x1xf32>
    %c0_15 = arith.constant 0 : index
    %c0_16 = arith.constant 0 : index
    %29 = vector.load %arg6[%c0_15, %c0_16] : memref<1x1xf32, #tpu.memory_space<vmem>>, vector<1x1xf32>
    %30 = vector.broadcast %29 : vector<1x1xf32> to vector<16x1xf32>
    %31 = arith.addf %28, %30 : vector<16x1xf32>
    %32 = vector.shape_cast %31 : vector<16x1xf32> to vector<2x8x1xf32>
    %cst_17 = arith.constant dense<0xFF800000> : vector<8x1xf32>
    %33 = vector.multi_reduction <maximumf>, %32, %cst_17 [0] : vector<2x8x1xf32> to vector<8x1xf32>
    %34 = vector.shape_cast %33 : vector<8x1xf32> to vector<1x8x1xf32>
    %35 = vector.broadcast %34 : vector<1x8x1xf32> to vector<2x8x1xf32>
    %36 = arith.subf %32, %35 : vector<2x8x1xf32>
    %37 = math.exp %36 : vector<2x8x1xf32>
    %cst_18 = arith.constant dense<0.000000e+00> : vector<8x1xf32>
    %38 = vector.multi_reduction <add>, %37, %cst_18 [0] : vector<2x8x1xf32> to vector<8x1xf32>
    %39 = vector.shape_cast %38 : vector<8x1xf32> to vector<1x8x1xf32>
    %40 = vector.broadcast %39 : vector<1x8x1xf32> to vector<2x8x1xf32>
    %41 = arith.divf %37, %40 : vector<2x8x1xf32>
    %42 = vector.shape_cast %8 : vector<16x512xf32> to vector<2x8x512xf32>
    %43 = vector.broadcast %41 : vector<2x8x1xf32> to vector<2x8x512xf32>
    %44 = arith.mulf %43, %42 : vector<2x8x512xf32>
    %cst_19 = arith.constant dense<0.000000e+00> : vector<2x512xf32>
    %45 = vector.multi_reduction <add>, %44, %cst_19 [1] : vector<2x8x512xf32> to vector<2x512xf32>
    %46 = arith.truncf %45 : vector<2x512xf32> to vector<2x512xbf16>
    %c0_20 = arith.constant 0 : index
    %c0_21 = arith.constant 0 : index
    %47 = vector.load %arg7[%c0_20, %c0_21] : memref<512x256xbf16, #tpu.memory_space<vmem>>, vector<512x256xbf16>
    %cst_22 = arith.constant dense<0.000000e+00> : vector<2x256xf32>
    %48 = tpu.matmul %46, %47, %cst_22 {dimension_numbers = #tpu.dot_dimension_numbers<[1], [0], [0], [1], [0, 0, 1, 1], [], []>} : vector<2x512xbf16>, vector<512x256xbf16>, vector<2x256xf32> -> vector<2x256xf32>
    %c0_23 = arith.constant 0 : index
    %c0_24 = arith.constant 0 : index
    %49 = vector.load %arg8[%c0_23, %c0_24] : memref<1x256xf32, #tpu.memory_space<vmem>>, vector<1x256xf32>
    %50 = vector.broadcast %49 : vector<1x256xf32> to vector<2x256xf32>
    %51 = arith.addf %48, %50 : vector<2x256xf32>
    %cst_25 = arith.constant 0.000000e+00 : f32
    %52 = vector.broadcast %cst_25 : f32 to vector<2x256xf32>
    %53 = arith.maximumf %51, %52 : vector<2x256xf32>
    %54 = arith.truncf %53 : vector<2x256xf32> to vector<2x256xbf16>
    %c0_26 = arith.constant 0 : index
    %c0_27 = arith.constant 0 : index
    %55 = vector.load %arg9[%c0_26, %c0_27] : memref<256x4xbf16, #tpu.memory_space<vmem>>, vector<256x4xbf16>
    %cst_28 = arith.constant dense<0.000000e+00> : vector<2x4xf32>
    %56 = tpu.matmul %54, %55, %cst_28 {dimension_numbers = #tpu.dot_dimension_numbers<[1], [0], [0], [1], [0, 0, 1, 1], [], []>} : vector<2x256xbf16>, vector<256x4xbf16>, vector<2x4xf32> -> vector<2x4xf32>
    %c0_29 = arith.constant 0 : index
    %c0_30 = arith.constant 0 : index
    %57 = vector.load %arg10[%c0_29, %c0_30] : memref<1x4xf32, #tpu.memory_space<vmem>>, vector<1x4xf32>
    %58 = vector.broadcast %57 : vector<1x4xf32> to vector<2x4xf32>
    %59 = arith.addf %56, %58 : vector<2x4xf32>
    %c0_31 = arith.constant 0 : index
    %c0_32 = arith.constant 0 : index
    %60 = vector.load %arg11[%c0_31, %c0_32] : memref<2x4xf32, #tpu.memory_space<vmem>>, vector<2x4xf32>
    tpu.vector_store %arg11[%c0_31, %c0_32], %59 {strides = array<i32>} : memref<2x4xf32, #tpu.memory_space<vmem>>, vector<2x4xf32>,
    return
  }
}

</mosaic_0001>

<bundles_post_ra>
// kernel: mil_attention_forward.1
= control target key start
LH: loop header
LB: loop body
LE: loop exit
PB: predicated region body
PF: predicated region fallthrough
CT: control target
= control target key end

     0   :  { %s3266_s0 = inlined_call_operand.vmem [shape: f32[16,64], index: 0, kind: input, shape index: {}]   ;;  %s3267_s1 = inlined_call_operand.vmem [shape: bf16[64,512], index: 1, kind: input, shape index: {}]   ;;  %s3268_s2 = inlined_call_operand.hbm [shape: f32[1,512], index: 2, kind: input, shape index: {}]   ;;  %s3269_s3 = inlined_call_operand.hbm [shape: bf16[512,512], index: 3, kind: input, shape index: {}]   ;;  %s3270_s4 = inlined_call_operand.hbm [shape: f32[1,512], index: 4, kind: input, shape index: {}]   ;;  %s3271_s5 = inlined_call_operand.hbm [shape: f32[1,256], index: 5, kind: input, shape index: {}]   ;;  %s3272_s6 = inlined_call_operand.<no memory space> [shape: f32[1,1], index: 6, kind: input, shape index: {}]   ;;  %s3273_s7 = inlined_call_operand.hbm [shape: bf16[512,256], index: 7, kind: input, shape index: {}]   ;;  %s3274_s8 = inlined_call_operand.hbm [shape: f32[1,256], index: 8, kind: input, shape index: {}]   ;;  %s3275_s9 = inlined_call_operand.vmem [shape: bf16[256,4], index: 9, kind: input, shape index: {}]   ;;  %s3276_s10 = inlined_call_operand.hbm [shape: f32[1,4], index: 10, kind: input, shape index: {}]   ;;  %s3277_s11 = inlined_call_operand.hbm [shape: f32[2,4], index: 11, kind: output, shape index: {}]  }
   0x1   :  { %v16_v0 = vstv %s3272_s6 }
   0x2   :  { %17 = vst [vmem:[#allocation2] sm:$0x1] %v16_v0 }
   0x3   :  { %18 = vsyncpa [#allocation4], 0 }
   0x4   :  { %19 = vsyncpa [#allocation7], 0 }
   0x5   :  { %20 = vsyncpa [#allocation10], 0 }
   0x6   :  { %21 = vsyncpa [#allocation13], 0 }
   0x7   :  { %22 = vsyncpa [#allocation5], 0  ;;  %s2968_s19 = smov [#allocation6]  }
   0x8   :  { %s42_s20 = sshll.u32 %s2968_s19, 4  ;;  %s43_s20 = int_to_ptr.vmem [resolvable:$true] %s42_s20 }
   0x9   :  { %s2806_s21 = scalar_lea.vmem %s43_s20, 16384  ;;  %p2811_p1 = scmp.lt.s32.totalorder %s43_s20, %s43_s20 }
   0xa   :  { %p2807_p0 = scmp.ne.s32.totalorder %s43_s20, %s2806_s21  ;;  %p2812_p2 = scmp.lt.s32.totalorder %s2806_s21, %s2806_s21 }
   0xc   :  { %p2813_p3 = por %p2812_p2, %p2811_p1 }
   0xe   :  { %p2814_p4 = pnand %p2813_p3, %p2807_p0 }
  0x10   :  { %2817 = shalt.err (!%p2814_p4)
}
  0x11   :  { %s2969_s22 = smov 256   ;;  %s2970_s23 = smov 16  }
  0x12   :  { %48 = dma.hbm_to_vmem [thread:$0]  %s3269_s3, 16384, %s43_s20, [#allocation7], %s2969_s22, %s2969_s22, %s2970_s23  }
  0x13   :  { %s2971_s25 = smov [#allocation9]   ;;  %s2972_s27 = smov [#allocation12]  }
  0x14   :  { %s65_s26 = sshll.u32 %s2971_s25, 4  ;;  %s89_s28 = sshll.u32 %s2972_s27, 4  ;;  %s66_s26 = int_to_ptr.vmem [resolvable:$true] %s65_s26  ;;  %s90_s28 = int_to_ptr.vmem [resolvable:$true] %s89_s28 }
  0x15   :  { %s2826_s29 = scalar_lea.vmem %s66_s26, 32  ;;  %p2831_p6 = scmp.lt.s32.totalorder %s66_s26, %s66_s26 }
  0x16   :  { %p2827_p5 = scmp.ne.s32.totalorder %s66_s26, %s2826_s29  ;;  %p2832_p7 = scmp.lt.s32.totalorder %s2826_s29, %s2826_s29 }
  0x18   :  { %p2833_p8 = por %p2832_p7, %p2831_p6 }
  0x1a   :  { %p2834_p9 = pnand %p2833_p8, %p2827_p5 }
  0x1c   :  { %2837 = shalt.err (!%p2834_p9)
}
  0x1d   :  { %68 = dma.hbm_to_vmem [thread:$0]  %s3271_s5, 32, %s66_s26, [#allocation10]  }
  0x1e   :  { %s2846_s13 = scalar_lea.vmem %s90_s28, 32  ;;  %p2851_p11 = scmp.lt.s32.totalorder %s90_s28, %s90_s28 }
  0x1f   :  { %p2847_p10 = scmp.ne.s32.totalorder %s90_s28, %s2846_s13  ;;  %p2852_p12 = scmp.lt.s32.totalorder %s2846_s13, %s2846_s13 }
  0x21   :  { %p2853_p13 = por %p2852_p12, %p2851_p11 }
  0x23   :  { %p2854_p0 = pnand %p2853_p13, %p2847_p10 }
  0x25   :  { %2857 = shalt.err (!%p2854_p0)
}
  0x26   :  { %92 = dma.hbm_to_vmem [thread:$0]  %s3274_s8, 32, %s90_s28, [#allocation13]  }
  0x27   :  { %s2973_s15 = smov [#allocation3]   ;;  %s2974_s17 = smov [#allocation8]  }
  0x28   :  { %s33_s16 = sshll.u32 %s2973_s15, 4  ;;  %s55_s18 = sshll.u32 %s2974_s17, 4  ;;  %s34_s16 = int_to_ptr.vmem [resolvable:$true] %s33_s16  ;;  %s56_s18 = int_to_ptr.vmem [resolvable:$true] %s55_s18 }
  0x29   :  { %s2866_s19 = scalar_lea.vmem %s34_s16, 64  ;;  %p2871_p2 = scmp.lt.s32.totalorder %s34_s16, %s34_s16 }
  0x2a   :  { %p2867_p1 = scmp.ne.s32.totalorder %s34_s16, %s2866_s19  ;;  %p2872_p3 = scmp.lt.s32.totalorder %s2866_s19, %s2866_s19 }
  0x2c   :  { %p2873_p4 = por %p2872_p3, %p2871_p2 }
  0x2e   :  { %p2874_p5 = pnand %p2873_p4, %p2867_p1 }
  0x30   :  { %2877 = shalt.err (!%p2874_p5)
}
  0x31   :  { %36 = dma.hbm_to_vmem [thread:$0]  %s3268_s2, 64, %s34_s16, [#allocation4]  }
  0x32   :  { %s2886_s21 = scalar_lea.vmem %s56_s18, 64  ;;  %p2891_p7 = scmp.lt.s32.totalorder %s56_s18, %s56_s18 }
  0x33   :  { %p2887_p6 = scmp.ne.s32.totalorder %s56_s18, %s2886_s21  ;;  %p2892_p8 = scmp.lt.s32.totalorder %s2886_s21, %s2886_s21 }
  0x35   :  { %p2893_p9 = por %p2892_p8, %p2891_p7 }
  0x37   :  { %p2894_p10 = pnand %p2893_p9, %p2887_p6 }
  0x39   :  { %2897 = shalt.err (!%p2894_p10)
}
  0x3a   :  { %58 = dma.hbm_to_vmem [thread:$0]  %s3270_s4, 64, %s56_s18, [#allocation7]  }
  0x3b   :  { %s2975_s23 = smov [#allocation11]  }
  0x3c   :  { %s76_s24 = sshll.u32 %s2975_s23, 4  ;;  %s77_s24 = int_to_ptr.vmem [resolvable:$true] %s76_s24 }
  0x3d   :  { %s2906_s6 = scalar_lea.vmem %s77_s24, 8192  ;;  %p2911_p12 = scmp.lt.s32.totalorder %s77_s24, %s77_s24 }
  0x3e   :  { %p2907_p11 = scmp.ne.s32.totalorder %s77_s24, %s2906_s6  ;;  %p2912_p13 = scmp.lt.s32.totalorder %s2906_s6, %s2906_s6 }
  0x40   :  { %p2913_p0 = por %p2912_p13, %p2911_p12 }
  0x42   :  { %p2914_p1 = pnand %p2913_p0, %p2907_p11 }
  0x44   :  { %2917 = shalt.err (!%p2914_p1)
}
  0x45   :  { %s2976_s2 = smov 128   ;;  %s2977_s25 = smov 8  }
  0x46   :  { %82 = dma.hbm_to_vmem [thread:$0]  %s3273_s7, 8192, %s77_s24, [#allocation10], %s2976_s2, %s2976_s2, %s2977_s25  }
  0x47   :  { %s2978_s28 = smov [#allocation14]  }
  0x48   :  { %s101_s29 = sshll.u32 %s2978_s28, 4  ;;  %s102_s29 = int_to_ptr.vmem [resolvable:$true] %s101_s29 }
  0x49   :  { %s2926_s4 = scalar_lea.vmem %s102_s29, 16  ;;  %s2930_s30 = scalar_lea.vmem %s102_s29, 32 }
  0x4a   :  { %p2927_p2 = scmp.ne.s32.totalorder %s102_s29, %s2926_s4  ;;  %p2931_p3 = scmp.lt.s32.totalorder %s102_s29, %s102_s29 }
  0x4b   :  { %p2932_p4 = scmp.lt.s32.totalorder %s2930_s30, %s2926_s4 }
  0x4d   :  { %p2933_p5 = por %p2932_p4, %p2931_p3 }
  0x4f   :  { %p2934_p6 = pnand %p2933_p5, %p2927_p2 }
  0x51   :  { %2937 = shalt.err (!%p2934_p6)
}
  0x52   :  { %104 = dma.hbm_to_vmem [thread:$0]  %s3276_s10, 16, %s102_s29, [#allocation13]  }
  0x53   :  { %2958 = dma.done.wait [#allocation4], 64  }
  0x54   :  { %2959 = vsyncadd [#allocation4], 4294967232 }
  0x55   :  { %2960 = dma.done.wait [#allocation7], 16448  }
  0x56   :  { %2961 = vsyncadd [#allocation7], 4294950848 }
  0x57   :  { %2962 = dma.done.wait [#allocation10], 8224  }
  0x58   :  { %2963 = vsyncadd [#allocation10], 4294959072 }
  0x59   :  { %2964 = dma.done.wait [#allocation13], 48  }
  0x5a   :  { %2965 = vsyncadd [#allocation13], 4294967248  ;;  %v2979_v1 = vmov 0   ;;  %v2440_v2 = vld [vmem:[%s3267_s1 + $0x64] ss:$16 sps:$4 sm:$0xff]   ;;  %v128_v11 = vld [vmem:[%s3266_s0 + $0x8] sm:$0xff] }
  0x5b   :  { %284 = vmatprep.mubr.bf16.mxu1 %v2979_v1  ;;  %2438 = vset.pattern.permute.xlu1 %v2979_v1  ;;  %v2442_v3 = vld [vmem:[%s3267_s1 + $0x60] ss:$16 sps:$4 sm:$0xff]   ;;  %v2443_v4 = vld [vmem:[%s3267_s1 + $0x44] ss:$16 sps:$4 sm:$0xff]   ;;  %v2454_v12 = vld [vmem:[%s3267_s1 + $0x6c] ss:$16 sps:$4 sm:$0xff]  }
  0x5c   :  { %2439 = vset.pattern.permute.xlu0 %v2979_v1  ;;  %260 = vmatprep.subr.bf16.mxu1 %v2440_v2  ;;  %v2445_v5 = vld [vmem:[%s3267_s1 + $0x40] ss:$16 sps:$4 sm:$0xff]   ;;  %v2446_v6 = vld [vmem:[%s3267_s1 + $0x24] ss:$16 sps:$4 sm:$0xff]   ;;  %v2464_v13 = vld [vmem:[#allocation6 + $0xe4] ss:$16 sps:$4 sm:$0xff]  }
  0x5d   :  { %261 = vmatpush1.bf16.msra.mxu1 %v2442_v3  ;;  %v2448_v7 = vld [vmem:[%s3267_s1 + $0x20] ss:$16 sps:$4 sm:$0xff]   ;;  %v2449_v8 = vld [vmem:[%s3267_s1 + $0x4] ss:$16 sps:$4 sm:$0xff]   ;;  %v2467_v15 = vld [vmem:[#allocation6 + $0xc4] ss:$16 sps:$4 sm:$0xff]   ;;  %1140 = vmatprep.subr.bf16.mxu0 %v2464_v13 }
  0x5e   :  { %262 = vmatprep.subr.bf16.mxu1 %v2443_v4  ;;  %v2451_v9 = vld [vmem:[%s3267_s1] ss:$16 sps:$4 sm:$0xff]   ;;  %v2466_v14 = vld [vmem:[#allocation6 + $0xe0] ss:$16 sps:$4 sm:$0xff]   ;;  %vm248_vm0 = vcmask 523264   ;;  %vm1375_vm1 = vcmask 7168  }
  0x5f   :  { %v127_v10 = vld [vmem:[%s3266_s0] sm:$0xff]  ;;  %v2452_v17 = vld [vmem:[%s3267_s1 + $0x68] ss:$16 sps:$4 sm:$0xff]   ;;  %1141 = vmatpush1.bf16.msra.mxu0 %v2466_v14  ;;  %v2457_v18 = vld [vmem:[%s3267_s1 + $0x4c] ss:$16 sps:$4 sm:$0xff]   ;;  %vm1557_vm2 = vcmask 1041409  }
  0x60   :  { %v129_v16 = vpack.c.bf16 %v128_v11, %v127_v10  ;;  %1142 = vmatprep.subr.bf16.mxu0 %v2467_v15  ;;  %v2469_v19 = vld [vmem:[#allocation6 + $0xc0] ss:$16 sps:$4 sm:$0xff]   ;;  %v2470_v20 = vld [vmem:[#allocation6 + $0xa4] ss:$16 sps:$4 sm:$0xff]   ;;  %v2553_v14 = vld [vmem:[#allocation6 + $0xec] ss:$16 sps:$4 sm:$0xff]  }
  0x61   :  { %263 = vmatpush1.bf16.msra.mxu1 %v2445_v5  ;;  %v2455_v21 = vld [vmem:[%s3267_s1 + $0x48] ss:$16 sps:$4 sm:$0xff]   ;;  %v2460_v22 = vld [vmem:[%s3267_s1 + $0x2c] ss:$16 sps:$4 sm:$0xff]   ;;  %vm2151_vm3 = vcmask 25600  }
  0x62   :  { %264 = vmatprep.subr.bf16.mxu1 %v2446_v6  ;;  %v2472_v23 = vld [vmem:[#allocation6 + $0xa0] ss:$16 sps:$4 sm:$0xff]   ;;  %v2473_v24 = vld [vmem:[#allocation6 + $0x84] ss:$16 sps:$4 sm:$0xff]  }
  0x63   :  { %1143 = vmatpush1.bf16.msra.mxu0 %v2469_v19  ;;  %v2458_v25 = vld [vmem:[%s3267_s1 + $0x28] ss:$16 sps:$4 sm:$0xff]   ;;  %v2463_v26 = vld [vmem:[%s3267_s1 + $0xc] ss:$16 sps:$4 sm:$0xff]  }
  0x64   :  { %1144 = vmatprep.subr.bf16.mxu0 %v2470_v20  ;;  %v2475_v27 = vld [vmem:[#allocation6 + $0x80] ss:$16 sps:$4 sm:$0xff]   ;;  %v2476_v28 = vld [vmem:[#allocation6 + $0x64] ss:$16 sps:$4 sm:$0xff]  }
  0x65   :  { %265 = vmatpush1.bf16.msra.mxu1 %v2448_v7  ;;  %v2461_v29 = vld [vmem:[%s3267_s1 + $0x8] ss:$16 sps:$4 sm:$0xff]  }
  0x66   :  { %266 = vmatprep.subr.bf16.mxu1 %v2449_v8  ;;  %v2480_v30 = vld [vmem:[#allocation6 + $0x2e4] ss:$16 sps:$4 sm:$0xff]   ;;  %v2481_v31 = vld [vmem:[#allocation6 + $0x60] ss:$16 sps:$4 sm:$0xff]  }
  0x67   :  { %1145 = vmatpush1.bf16.msra.mxu0 %v2472_v23  ;;  %v2482_v32 = vld [vmem:[#allocation6 + $0x44] ss:$16 sps:$4 sm:$0xff]   ;;  %v2478_v33 = vld [vmem:[#allocation6 + $0x2e0] ss:$16 sps:$4 sm:$0xff]   ;;  %v148_v23 = vlaneseq }
  0x68   :  { %1146 = vmatprep.subr.bf16.mxu0 %v2473_v24  ;;  %v2486_v34 = vld [vmem:[#allocation6 + $0x2c4] ss:$16 sps:$4 sm:$0xff]   ;;  %v2487_v35 = vld [vmem:[#allocation6 + $0x40] ss:$16 sps:$4 sm:$0xff]  }
  0x69   :  { %267 = vmatpush1.bf16.msra.mxu1 %v2451_v9  ;;  %v2488_v36 = vld [vmem:[#allocation6 + $0x24] ss:$16 sps:$4 sm:$0xff]   ;;  %v2484_v37 = vld [vmem:[#allocation6 + $0x2c0] ss:$16 sps:$4 sm:$0xff]   ;;  %v3121_v24 = vshrl.u32 %v148_v23, 7 }
  0x6a   :  { %303 = vmatprep.subr.bf16.mxu1 %v2454_v12  ;;  %v2492_v38 = vld [vmem:[#allocation6 + $0x2a4] ss:$16 sps:$4 sm:$0xff]   ;;  %v2493_v39 = vld [vmem:[#allocation6 + $0x20] ss:$16 sps:$4 sm:$0xff]   ;;  %v2599_v23 = vld [vmem:[#allocation6 + $0x268] ss:$16 sps:$4 sm:$0xff]  }
  0x6b   :  { %1147 = vmatpush1.bf16.msra.mxu0 %v2475_v27  ;;  %v2494_v40 = vld [vmem:[#allocation6 + $0x4] ss:$16 sps:$4 sm:$0xff]   ;;  %v2490_v41 = vld [vmem:[#allocation6 + $0x2a0] ss:$16 sps:$4 sm:$0xff]   ;;  %v3127_v27 = vsub.s32 0, %v3121_v24 }
  0x6c   :  { %2187 = vmatmul.mubr.msk.bf16.vlgmr.msra.gmra.mxu1 %vm248_vm0, %v129_v16  ;;  %1148 = vmatprep.subr.bf16.mxu0 %v2476_v28  ;;  %v2498_v42 = vld [vmem:[#allocation6 + $0x284] ss:$16 sps:$4 sm:$0xff]   ;;  %v2499_v43 = vld [vmem:[#allocation6] ss:$16 sps:$4 sm:$0xff]  }
  0x6d   :  { %304 = vmatpush1.bf16.msra.mxu1 %v2452_v17  ;;  %327 = vmatprep.mubr.bf16.mxu1 %v2979_v1  ;;  %v2500_v44 = vld [vmem:[#allocation6 + $0x1e4] ss:$16 sps:$4 sm:$0xff]   ;;  %v2496_v45 = vld [vmem:[#allocation6 + $0x280] ss:$16 sps:$4 sm:$0xff]  }
  0x6e   :  { %305 = vmatprep.subr.bf16.mxu1 %v2457_v18  ;;  %v2504_v46 = vld [vmem:[#allocation6 + $0x264] ss:$16 sps:$4 sm:$0xff]   ;;  %v2505_v47 = vld [vmem:[#allocation6 + $0x1e0] ss:$16 sps:$4 sm:$0xff]  }
  0x6f   :  { %1149 = vmatpush1.bf16.msra.mxu0 %v2481_v31  ;;  %v2506_v48 = vld [vmem:[#allocation6 + $0x1c4] ss:$16 sps:$4 sm:$0xff]   ;;  %v2502_v49 = vld [vmem:[#allocation6 + $0x260] ss:$16 sps:$4 sm:$0xff]  }
  0x70   :  { %1150 = vmatprep.subr.bf16.mxu0 %v2482_v32  ;;  %v2510_v50 = vld [vmem:[#allocation6 + $0x244] ss:$16 sps:$4 sm:$0xff]   ;;  %v2511_v51 = vld [vmem:[#allocation6 + $0x1c0] ss:$16 sps:$4 sm:$0xff]  }
  0x71   :  { %306 = vmatpush1.bf16.msra.mxu1 %v2455_v21  ;;  %v2512_v52 = vld [vmem:[#allocation6 + $0x1a4] ss:$16 sps:$4 sm:$0xff]   ;;  %v2508_v53 = vld [vmem:[#allocation6 + $0x240] ss:$16 sps:$4 sm:$0xff]  }
  0x72   :  { %307 = vmatprep.subr.bf16.mxu1 %v2460_v22  ;;  %v2516_v54 = vld [vmem:[#allocation6 + $0x224] ss:$16 sps:$4 sm:$0xff]   ;;  %v2517_v55 = vld [vmem:[#allocation6 + $0x1a0] ss:$16 sps:$4 sm:$0xff]   ;;  %v2577_v22 = vld [vmem:[#allocation6 + $0x2ec] ss:$16 sps:$4 sm:$0xff]  }
  0x73   :  { %1151 = vmatpush1.bf16.msra.mxu0 %v2487_v35  ;;  %v2518_v56 = vld [vmem:[#allocation6 + $0x184] ss:$16 sps:$4 sm:$0xff]   ;;  %v2514_v57 = vld [vmem:[#allocation6 + $0x220] ss:$16 sps:$4 sm:$0xff]  }
  0x74   :  { %1152 = vmatprep.subr.bf16.mxu0 %v2488_v36  ;;  %v2522_v58 = vld [vmem:[#allocation6 + $0x204] ss:$16 sps:$4 sm:$0xff]   ;;  %v2523_v59 = vld [vmem:[#allocation6 + $0x180] ss:$16 sps:$4 sm:$0xff]  }
  0x75   :  { %308 = vmatpush1.bf16.msra.mxu1 %v2458_v25  ;;  %v2524_v60 = vld [vmem:[#allocation6 + $0x164] ss:$16 sps:$4 sm:$0xff]   ;;  %v2520_v61 = vld [vmem:[#allocation6 + $0x200] ss:$16 sps:$4 sm:$0xff]   ;;  %v3124_v25 = vsub.s32 1, %v3121_v24 }
  0x76   :  { %309 = vmatprep.subr.bf16.mxu1 %v2463_v26  ;;  %v2528_v62 = vld [vmem:[#allocation6 + $0x3e4] ss:$16 sps:$4 sm:$0xff]   ;;  %v2529_v63 = vld [vmem:[#allocation6 + $0x160] ss:$16 sps:$4 sm:$0xff]   ;;  %v146_v26 = vld [vmem:[#allocation3] sm:$0xf] }
  0x77   :  { %1153 = vmatpush1.bf16.msra.mxu0 %v2493_v39  ;;  %v2526_v0 = vld [vmem:[#allocation6 + $0x3e0] ss:$16 sps:$4 sm:$0xff]   ;;  %v2530_v1 = vld [vmem:[#allocation6 + $0x144] ss:$16 sps:$4 sm:$0xff]  }
  0x78   :  { %1154 = vmatprep.subr.bf16.mxu0 %v2494_v40  ;;  %v2534_v2 = vld [vmem:[#allocation6 + $0x3c4] ss:$16 sps:$4 sm:$0xff]   ;;  %v2532_v3 = vld [vmem:[#allocation6 + $0x3c0] ss:$16 sps:$4 sm:$0xff]  }
  0x79   :  { %310 = vmatpush1.bf16.msra.mxu1 %v2461_v29  ;;  %v2535_v4 = vld [vmem:[#allocation6 + $0x140] ss:$16 sps:$4 sm:$0xff]   ;;  %v2536_v5 = vld [vmem:[#allocation6 + $0x124] ss:$16 sps:$4 sm:$0xff]   ;;  %v155_v29 = vrot.slane %v146_v26, %v3124_v25 }
  0x7a   :  { %1183 = vmatprep.subr.bf16.mxu1 %v2480_v30  ;;  %v2540_v6 = vld [vmem:[#allocation6 + $0x3a4] ss:$16 sps:$4 sm:$0xff]   ;;  %v2538_v7 = vld [vmem:[#allocation6 + $0x3a0] ss:$16 sps:$4 sm:$0xff]   ;;  %v151_v30 = vrot.slane %v146_v26, %v3127_v27 }
  0x7b   :  { %1155 = vmatpush1.bf16.msra.mxu0 %v2499_v43  ;;  %v2541_v8 = vld [vmem:[#allocation6 + $0x120] ss:$16 sps:$4 sm:$0xff]   ;;  %v2542_v9 = vld [vmem:[#allocation6 + $0x104] ss:$16 sps:$4 sm:$0xff]   ;;  %v2551_v43 = vld [vmem:[#allocation6 + $0xe8] ss:$16 sps:$4 sm:$0xff]  }
  0x7c   :  { %2188 = vmatmul.mubr.msk.bf16.vlgmr.msra.gmra.mxu1 %vm248_vm0, %v129_v16  ;;  %1156 = vmatprep.subr.bf16.mxu0 %v2500_v44  ;;  %v2546_v10 = vld [vmem:[#allocation6 + $0x384] ss:$16 sps:$4 sm:$0xff]   ;;  %v2544_v11 = vld [vmem:[#allocation6 + $0x380] ss:$16 sps:$4 sm:$0xff]  }
  0x7d   :  { %1184 = vmatpush1.bf16.msra.mxu1 %v2478_v33  ;;  %v2547_v12 = vld [vmem:[#allocation6 + $0x100] ss:$16 sps:$4 sm:$0xff]   ;;  %v2550_v13 = vld [vmem:[#allocation6 + $0x364] ss:$16 sps:$4 sm:$0xff]  }
  0x7e   :  { %1185 = vmatprep.subr.bf16.mxu1 %v2486_v34  ;;  %v2548_v15 = vld [vmem:[#allocation6 + $0x360] ss:$16 sps:$4 sm:$0xff]   ;;  %v2556_v16 = vld [vmem:[#allocation6 + $0x344] ss:$16 sps:$4 sm:$0xff]  }
  0x7f   :  { %1157 = vmatpush2.bf16.msra.mxu0 %v2505_v47  ;;  %v2554_v17 = vld [vmem:[#allocation6 + $0x340] ss:$16 sps:$4 sm:$0xff]   ;;  %v2562_v18 = vld [vmem:[#allocation6 + $0x324] ss:$16 sps:$4 sm:$0xff]   ;;  %v158_v47 = vsub.s32 2, %v3121_v24 }
  0x80   :  { %1158 = vmatprep.subr.bf16.mxu0 %v2506_v48  ;;  %v2560_v19 = vld [vmem:[#allocation6 + $0x320] ss:$16 sps:$4 sm:$0xff]   ;;  %v2568_v20 = vld [vmem:[#allocation6 + $0x304] ss:$16 sps:$4 sm:$0xff]   ;;  %v2557_v48 = vld [vmem:[#allocation6 + $0xc8] ss:$16 sps:$4 sm:$0xff]  }
  0x81   :  { %1186 = vmatpush1.bf16.msra.mxu1 %v2484_v37  ;;  %v2566_v21 = vld [vmem:[#allocation6 + $0x300] ss:$16 sps:$4 sm:$0xff]  }
  0x82   :  { %1187 = vmatprep.subr.bf16.mxu1 %v2492_v38 }
  0x83   :  { %1159 = vmatpush2.bf16.msra.mxu0 %v2511_v51 }
  0x84   :  { %1160 = vmatprep.subr.bf16.mxu0 %v2512_v52  ;;  %v159_v52 = vrot.slane %v146_v26, %v158_v47 }
  0x85   :  { %1188 = vmatpush1.bf16.msra.mxu1 %v2490_v41 }
  0x86   :  { %1189 = vmatprep.subr.bf16.mxu1 %v2498_v42 }
  0x87   :  { %1161 = vmatpush2.bf16.msra.mxu0 %v2517_v55 }
  0x88   :  { %1162 = vmatprep.subr.bf16.mxu0 %v2518_v56  ;;  %v2571_v56 = vld [vmem:[#allocation6 + $0x8c] ss:$16 sps:$4 sm:$0xff]  }
  0x89   :  { %1190 = vmatpush1.bf16.msra.mxu1 %v2496_v45  ;;  %v2559_v45 = vld [vmem:[#allocation6 + $0xcc] ss:$16 sps:$4 sm:$0xff]  }
  0x8a   :  { %1191 = vmatprep.subr.bf16.mxu1 %v2504_v46  ;;  %v162_v46 = vsub.s32 3, %v3121_v24 }
  0x8b   :  { %1163 = vmatpush2.bf16.msra.mxu0 %v2523_v59 }
  0x8c   :  { %1164 = vmatprep.subr.bf16.mxu0 %v2524_v60  ;;  %v163_v51 = vrot.slane %v146_v26, %v162_v46  ;;  %v2604_v26 = vld [vmem:[#allocation6 + $0x1cc] ss:$16 sps:$4 sm:$0xff]  }
  0x8d   :  { %1192 = vmatpush1.bf16.msra.mxu1 %v2502_v49 }
  0x8e   :  { %1193 = vmatprep.subr.bf16.mxu1 %v2510_v50  ;;  %v2565_v50 = vld [vmem:[#allocation6 + $0xac] ss:$16 sps:$4 sm:$0xff]  }
  0x8f   :  { %1165 = vmatpush2.bf16.msra.mxu0 %v2529_v63 }
  0x90   :  { %1166 = vmatprep.subr.bf16.mxu0 %v2530_v1 }
  0x91   :  { %1194 = vmatpush1.bf16.msra.mxu1 %v2508_v53 }
  0x92   :  { %1195 = vmatprep.subr.bf16.mxu1 %v2516_v54  ;;  %v2563_v54 = vld [vmem:[#allocation6 + $0xa8] ss:$16 sps:$4 sm:$0xff]  }
  0x93   :  { %1167 = vmatpush2.bf16.msra.mxu0 %v2535_v4 }
  0x94   :  { %1168 = vmatprep.subr.bf16.mxu0 %v2536_v5  ;;  %v2572_v5 = vld [vmem:[#allocation6 + $0x68] ss:$16 sps:$4 sm:$0xff]  }
  0x95   :  { %1196 = vmatpush1.bf16.msra.mxu1 %v2514_v57 }
  0x96   :  { %1197 = vmatprep.subr.bf16.mxu1 %v2522_v58 }
  0x97   :  { %1169 = vmatpush2.bf16.msra.mxu0 %v2541_v8  ;;  %v2580_v8 = vld [vmem:[#allocation6 + $0x4c] ss:$16 sps:$4 sm:$0xff]  }
  0x98   :  { %1170 = vmatprep.subr.bf16.mxu0 %v2542_v9  ;;  %v2583_v9 = vld [vmem:[#allocation6 + $0x2cc] ss:$16 sps:$4 sm:$0xff]  }
  0x99   :  { %1198 = vmatpush1.bf16.msra.mxu1 %v2520_v61 }
  0x9a   :  { %1199 = vmatprep.subr.bf16.mxu1 %v2528_v62  ;;  %v2569_v62 = vld [vmem:[#allocation6 + $0x88] ss:$16 sps:$4 sm:$0xff]  }
  0x9b   :  { %1171 = vmatpush2.bf16.msra.mxu0 %v2547_v12  ;;  %v2586_v12 = vld [vmem:[#allocation6 + $0x2c] ss:$16 sps:$4 sm:$0xff]  }
  0x9c   :  { %1226 = vmatprep.subr.bf16.mxu0 %v2553_v14  ;;  %v2584_v14 = vld [vmem:[#allocation6 + $0x28] ss:$16 sps:$4 sm:$0xff]  }
  0x9d   :  { %1200 = vmatpush2.bf16.msra.mxu1 %v2526_v0  ;;  %v2574_v0 = vld [vmem:[#allocation6 + $0x6c] ss:$16 sps:$4 sm:$0xff]  }
  0x9e   :  { %1201 = vmatprep.subr.bf16.mxu1 %v2534_v2 }
  0xa1   :  { %1202 = vmatpush2.bf16.msra.mxu1 %v2532_v3 }
  0xa2   :  { %1203 = vmatprep.subr.bf16.mxu1 %v2540_v6  ;;  %v2575_v6 = vld [vmem:[#allocation6 + $0x2e8] ss:$16 sps:$4 sm:$0xff]  }
  0xa5   :  { %1204 = vmatpush2.bf16.msra.mxu1 %v2538_v7 }
  0xa6   :  { %1205 = vmatprep.subr.bf16.mxu1 %v2546_v10  ;;  %v2578_v10 = vld [vmem:[#allocation6 + $0x48] ss:$16 sps:$4 sm:$0xff]  }
  0xa9   :  { %1206 = vmatpush2.bf16.msra.mxu1 %v2544_v11  ;;  %v2581_v11 = vld [vmem:[#allocation6 + $0x2c8] ss:$16 sps:$4 sm:$0xff]  }
  0xaa   :  { %1207 = vmatprep.subr.bf16.mxu1 %v2550_v13  ;;  %v2589_v13 = vld [vmem:[#allocation6 + $0x2ac] ss:$16 sps:$4 sm:$0xff]  }
  0xad   :  { %1208 = vmatpush2.bf16.msra.mxu1 %v2548_v15  ;;  %v2587_v15 = vld [vmem:[#allocation6 + $0x2a8] ss:$16 sps:$4 sm:$0xff]  }
  0xae   :  { %1209 = vmatprep.subr.bf16.mxu1 %v2556_v16  ;;  %v2592_v16 = vld [vmem:[#allocation6 + $0xc] ss:$16 sps:$4 sm:$0xff]  }
  0xb1   :  { %1210 = vmatpush2.bf16.msra.mxu1 %v2554_v17  ;;  %v2595_v17 = vld [vmem:[#allocation6 + $0x28c] ss:$16 sps:$4 sm:$0xff]  }
  0xb2   :  { %1211 = vmatprep.subr.bf16.mxu1 %v2562_v18  ;;  %v2590_v18 = vld [vmem:[#allocation6 + $0x8] ss:$16 sps:$4 sm:$0xff]  }
  0xb5   :  { %1212 = vmatpush2.bf16.msra.mxu1 %v2560_v19  ;;  %v2593_v19 = vld [vmem:[#allocation6 + $0x288] ss:$16 sps:$4 sm:$0xff]  }
  0xb6   :  { %1213 = vmatprep.subr.bf16.mxu1 %v2568_v20  ;;  %v2598_v20 = vld [vmem:[#allocation6 + $0x1ec] ss:$16 sps:$4 sm:$0xff]  }
  0xb9   :  { %1214 = vmatpush2.bf16.msra.mxu1 %v2566_v21  ;;  %v2601_v21 = vld [vmem:[#allocation6 + $0x26c] ss:$16 sps:$4 sm:$0xff]  }
  0xba   :  { %1269 = vmatprep.subr.bf16.mxu1 %v2577_v22  ;;  %v2596_v22 = vld [vmem:[#allocation6 + $0x1e8] ss:$16 sps:$4 sm:$0xff]  }
 0x12c   :  { %v286_v28 = vpop.f32.mrf.mxu1 }
 0x12d   :  { %v3135_v35 = vadd.f32 %v286_v28, %v151_v30  ;;  %v2607_v28 = vld [vmem:[#allocation6 + $0x24c] ss:$16 sps:$4 sm:$0xff]  }
 0x12e   :  { %v288_v31 = vpop.f32.mrf.mxu1 }
 0x12f   :  { %v3131_v33 = vadd.f32 %v288_v31, %v155_v29  ;;  %v338_v41 = vmax.f32 %v3135_v35, 0.0  ;;  %v2610_v31 = vld [vmem:[#allocation6 + $0x1ac] ss:$16 sps:$4 sm:$0xff]  }
 0x130   :  { %v290_v32 = vpop.f32.mrf.mxu1 }
 0x131   :  { %v3133_v34 = vadd.f32 %v290_v32, %v151_v30  ;;  %v339_v39 = vmax.f32 %v3131_v33, 0.0  ;;  %v2605_v30 = vld [vmem:[#allocation6 + $0x248] ss:$16 sps:$4 sm:$0xff]   ;;  %v2613_v32 = vld [vmem:[#allocation6 + $0x22c] ss:$16 sps:$4 sm:$0xff]  }
 0x132   :  { %v292_v36 = vpop.f32.mrf.mxu1 }
 0x133   :  { %v3137_v37 = vadd.f32 %v292_v36, %v155_v29  ;;  %v342_v38 = vmax.f32 %v3133_v34, 0.0  ;;  %v2602_v29 = vld [vmem:[#allocation6 + $0x1c8] ss:$16 sps:$4 sm:$0xff]  }
 0x134   :  { %v2608_v36 = vld [vmem:[#allocation6 + $0x1a8] ss:$16 sps:$4 sm:$0xff]  }
 0x135   :  { %v343_v40 = vmax.f32 %v3137_v37, 0.0  ;;  %v3151_v44 = vpack.c.bf16 %v342_v38, %v338_v41 }
 0x137   :  { %v347_v42 = vpack.c.bf16 %v343_v40, %v339_v39 }
 0x139   :  { %1172 = vmatprep.mubr.bf16.mxu0 %v347_v42 }
 0x13a   :  { %1173 = vmatmul.mubr.bf16.vlgmr.msra.gmra.mxu0 %v3151_v44 }
 0x13b   :  { %1227 = vmatpush1.bf16.msra.mxu0 %v2551_v43  ;;  %1258 = vmatprep.mubr.bf16.mxu0 %v347_v42  ;;  %v2611_v42 = vld [vmem:[#allocation6 + $0x228] ss:$16 sps:$4 sm:$0xff]   ;;  %v2616_v43 = vld [vmem:[#allocation6 + $0x18c] ss:$16 sps:$4 sm:$0xff]  }
 0x13c   :  { %v329_v49 = vpop.f32.mrf.mxu1  ;;  %1228 = vmatprep.subr.bf16.mxu0 %v2559_v45  ;;  %v2619_v45 = vld [vmem:[#allocation6 + $0x20c] ss:$16 sps:$4 sm:$0xff]  }
 0x13d   :  { %v3164_v59 = vadd.f32 %v329_v49, %v159_v52  ;;  %v2617_v49 = vld [vmem:[#allocation6 + $0x208] ss:$16 sps:$4 sm:$0xff]  }
 0x13e   :  { %v331_v53 = vpop.f32.mrf.mxu1 }
 0x13f   :  { %1229 = vmatpush1.bf16.msra.mxu0 %v2557_v48  ;;  %v3160_v57 = vadd.f32 %v331_v53, %v163_v51  ;;  %v340_v3 = vmax.f32 %v3164_v59, 0.0  ;;  %v2614_v48 = vld [vmem:[#allocation6 + $0x188] ss:$16 sps:$4 sm:$0xff]  }
 0x140   :  { %v333_v55 = vpop.f32.mrf.mxu1  ;;  %1230 = vmatprep.subr.bf16.mxu0 %v2565_v50  ;;  %v2622_v50 = vld [vmem:[#allocation6 + $0x16c] ss:$16 sps:$4 sm:$0xff]   ;;  %v2623_v53 = vld [vmem:[#allocation6 + $0x3e8] ss:$16 sps:$4 sm:$0xff]  }
 0x141   :  { %v3162_v58 = vadd.f32 %v333_v55, %v159_v52  ;;  %v341_v1 = vmax.f32 %v3160_v57, 0.0  ;;  %v2620_v52 = vld [vmem:[#allocation6 + $0x168] ss:$16 sps:$4 sm:$0xff]   ;;  %v2631_v55 = vld [vmem:[#allocation6 + $0x3cc] ss:$16 sps:$4 sm:$0xff]  }
 0x142   :  { %v335_v60 = vpop.f32.mrf.mxu1 }
 0x143   :  { %v3166_v61 = vadd.f32 %v335_v60, %v163_v51  ;;  %1231 = vmatpush1.bf16.msra.mxu0 %v2563_v54  ;;  %v344_v63 = vmax.f32 %v3162_v58, 0.0  ;;  %v2625_v51 = vld [vmem:[#allocation6 + $0x3ec] ss:$16 sps:$4 sm:$0xff]   ;;  %v2629_v60 = vld [vmem:[#allocation6 + $0x3c8] ss:$16 sps:$4 sm:$0xff]  }
 0x144   :  { %1232 = vmatprep.subr.bf16.mxu0 %v2571_v56  ;;  %v2628_v54 = vld [vmem:[#allocation6 + $0x14c] ss:$16 sps:$4 sm:$0xff]   ;;  %v2626_v56 = vld [vmem:[#allocation6 + $0x148] ss:$16 sps:$4 sm:$0xff]  }
 0x145   :  { %v345_v2 = vmax.f32 %v3166_v61, 0.0  ;;  %v3180_v7 = vpack.c.bf16 %v344_v63, %v340_v3 }
 0x147   :  { %v349_v4 = vpack.c.bf16 %v345_v2, %v341_v1  ;;  %1233 = vmatpush1.bf16.msra.mxu0 %v2569_v62  ;;  %v2634_v62 = vld [vmem:[#allocation6 + $0x12c] ss:$16 sps:$4 sm:$0xff]  }
 0x148   :  { %1234 = vmatprep.subr.bf16.mxu0 %v2574_v0  ;;  %v2637_v0 = vld [vmem:[#allocation6 + $0x3ac] ss:$16 sps:$4 sm:$0xff]  }
 0x149   :  { %1215 = vmatprep.mubr.bf16.mxu1 %v349_v4 }
 0x14a   :  { %1216 = vmatmul.mubr.bf16.vlgmr.msra.gmra.mxu1 %v3180_v7 }
 0x14b   :  { %1235 = vmatpush1.bf16.msra.mxu0 %v2572_v5  ;;  %1270 = vmatpush1.bf16.msra.mxu1 %v2575_v6  ;;  %v2635_v5 = vld [vmem:[#allocation6 + $0x3a8] ss:$16 sps:$4 sm:$0xff]   ;;  %v2640_v6 = vld [vmem:[#allocation6 + $0x10c] ss:$16 sps:$4 sm:$0xff]  }
 0x14c   :  { %1301 = vmatprep.mubr.bf16.mxu1 %v349_v4  ;;  %1236 = vmatprep.subr.bf16.mxu0 %v2580_v8  ;;  %v2632_v4 = vld [vmem:[#allocation6 + $0x128] ss:$16 sps:$4 sm:$0xff]   ;;  %v2643_v8 = vld [vmem:[#allocation6 + $0x38c] ss:$16 sps:$4 sm:$0xff]  }
 0x14d   :  { %1271 = vmatprep.subr.bf16.mxu1 %v2583_v9  ;;  %v2638_v9 = vld [vmem:[#allocation6 + $0x108] ss:$16 sps:$4 sm:$0xff]  }
 0x14f   :  { %1237 = vmatpush1.bf16.msra.mxu0 %v2578_v10  ;;  %1272 = vmatpush1.bf16.msra.mxu1 %v2581_v11  ;;  %v2641_v10 = vld [vmem:[#allocation6 + $0x388] ss:$16 sps:$4 sm:$0xff]   ;;  %v2646_v11 = vld [vmem:[#allocation6 + $0x36c] ss:$16 sps:$4 sm:$0xff]  }
 0x150   :  { %1238 = vmatprep.subr.bf16.mxu0 %v2586_v12  ;;  %1273 = vmatprep.subr.bf16.mxu1 %v2589_v13  ;;  %v2644_v12 = vld [vmem:[#allocation6 + $0x368] ss:$16 sps:$4 sm:$0xff]   ;;  %v2649_v13 = vld [vmem:[#allocation6 + $0x34c] ss:$16 sps:$4 sm:$0xff]  }
 0x153   :  { %1239 = vmatpush1.bf16.msra.mxu0 %v2584_v14  ;;  %1274 = vmatpush1.bf16.msra.mxu1 %v2587_v15  ;;  %v2647_v14 = vld [vmem:[#allocation6 + $0x348] ss:$16 sps:$4 sm:$0xff]   ;;  %v2652_v15 = vld [vmem:[#allocation6 + $0x32c] ss:$16 sps:$4 sm:$0xff]  }
 0x154   :  { %1240 = vmatprep.subr.bf16.mxu0 %v2592_v16  ;;  %1275 = vmatprep.subr.bf16.mxu1 %v2595_v17  ;;  %v2650_v16 = vld [vmem:[#allocation6 + $0x328] ss:$16 sps:$4 sm:$0xff]   ;;  %v2655_v17 = vld [vmem:[#allocation6 + $0x30c] ss:$16 sps:$4 sm:$0xff]  }
 0x157   :  { %1241 = vmatpush1.bf16.msra.mxu0 %v2590_v18  ;;  %1276 = vmatpush1.bf16.msra.mxu1 %v2593_v19  ;;  %v2653_v18 = vld [vmem:[#allocation6 + $0x308] ss:$16 sps:$4 sm:$0xff]  }
 0x158   :  { %1242 = vmatprep.subr.bf16.mxu0 %v2598_v20  ;;  %1277 = vmatprep.subr.bf16.mxu1 %v2601_v21 }
 0x15b   :  { %1243 = vmatpush2.bf16.msra.mxu0 %v2596_v22  ;;  %1278 = vmatpush1.bf16.msra.mxu1 %v2599_v23 }
 0x15c   :  { %1244 = vmatprep.subr.bf16.mxu0 %v2604_v26  ;;  %1279 = vmatprep.subr.bf16.mxu1 %v2607_v28  ;;  %v478_v28 = vld [vmem:[#allocation8] sm:$0xf] }
 0x15f   :  { %1245 = vmatpush2.bf16.msra.mxu0 %v2602_v29  ;;  %1280 = vmatpush1.bf16.msra.mxu1 %v2605_v30 }
 0x160   :  { %1246 = vmatprep.subr.bf16.mxu0 %v2610_v31  ;;  %1281 = vmatprep.subr.bf16.mxu1 %v2613_v32  ;;  %v491_v31 = vrot.slane %v478_v28, %v158_v47  ;;  %v495_v32 = vrot.slane %v478_v28, %v162_v46 }
 0x163   :  { %1247 = vmatpush2.bf16.msra.mxu0 %v2608_v36  ;;  %1282 = vmatpush1.bf16.msra.mxu1 %v2611_v42 }
 0x164   :  { %1248 = vmatprep.subr.bf16.mxu0 %v2616_v43  ;;  %1283 = vmatprep.subr.bf16.mxu1 %v2619_v45 }
 0x167   :  { %1249 = vmatpush2.bf16.msra.mxu0 %v2614_v48  ;;  %1284 = vmatpush1.bf16.msra.mxu1 %v2617_v49 }
 0x168   :  { %1250 = vmatprep.subr.bf16.mxu0 %v2622_v50  ;;  %1285 = vmatprep.subr.bf16.mxu1 %v2625_v51 }
 0x16b   :  { %1251 = vmatpush2.bf16.msra.mxu0 %v2620_v52  ;;  %1286 = vmatpush2.bf16.msra.mxu1 %v2623_v53 }
 0x16c   :  { %1252 = vmatprep.subr.bf16.mxu0 %v2628_v54  ;;  %1287 = vmatprep.subr.bf16.mxu1 %v2631_v55 }
 0x16f   :  { %1253 = vmatpush2.bf16.msra.mxu0 %v2626_v56  ;;  %1288 = vmatpush2.bf16.msra.mxu1 %v2629_v60 }
 0x170   :  { %1254 = vmatprep.subr.bf16.mxu0 %v2634_v62  ;;  %1289 = vmatprep.subr.bf16.mxu1 %v2637_v0  ;;  %v483_v0 = vrot.slane %v478_v28, %v3127_v27 }
 0x173   :  { %1255 = vmatpush2.bf16.msra.mxu0 %v2632_v4  ;;  %1290 = vmatpush2.bf16.msra.mxu1 %v2635_v5  ;;  %v487_v4 = vrot.slane %v478_v28, %v3124_v25 }
 0x174   :  { %1256 = vmatprep.subr.bf16.mxu0 %v2640_v6  ;;  %1291 = vmatprep.subr.bf16.mxu1 %v2643_v8 }
 0x177   :  { %1257 = vmatpush2.bf16.msra.mxu0 %v2638_v9  ;;  %1292 = vmatpush2.bf16.msra.mxu1 %v2641_v10 }
 0x178   :  { %1293 = vmatprep.subr.bf16.mxu1 %v2646_v11 }
 0x17a   :  { %1259 = vmatmul.mubr.bf16.vlgmr.msra.gmra.mxu0 %v3151_v44 }
 0x17b   :  { %1294 = vmatpush2.bf16.msra.mxu1 %v2644_v12 }
 0x17c   :  { %1295 = vmatprep.subr.bf16.mxu1 %v2649_v13 }
 0x17f   :  { %1296 = vmatpush2.bf16.msra.mxu1 %v2647_v14 }
 0x180   :  { %1297 = vmatprep.subr.bf16.mxu1 %v2652_v15 }
 0x183   :  { %1298 = vmatpush2.bf16.msra.mxu1 %v2650_v16 }
 0x184   :  { %1299 = vmatprep.subr.bf16.mxu1 %v2655_v17 }
 0x187   :  { %1300 = vmatpush2.bf16.msra.mxu1 %v2653_v18 }
 0x18a   :  { %1302 = vmatmul.mubr.bf16.vlgmr.msra.gmra.mxu1 %v3180_v7 }
 0x1fa   :  { %v1174_v19 = vpop.f32.mrf.mxu0 }
 0x1fb   :  { %v1175_v5 = vadd.f32 %v1174_v19, %v483_v0 }
 0x1fc   :  { %v1176_v20 = vpop.f32.mrf.mxu0 }
 0x1fd   :  { %v1177_v6 = vadd.f32 %v1176_v20, %v487_v4  ;;  %v1344_v20 = vld [vmem:[#allocation9] sm:$0x3] }
 0x1fe   :  { %v1178_v21 = vpop.f32.mrf.mxu0  ;;  %v1349_v28 = vrot.slane %v1344_v20, %v3127_v27 }
 0x1ff   :  { %v1179_v10 = vadd.f32 %v1178_v21, %v483_v0  ;;  %v2665_v0 = vld [vmem:[#allocation11 + $0x160] ss:$8 sps:$4 sm:$0xff]  }
 0x200   :  { %v1180_v23 = vpop.f32.mrf.mxu0 }
 0x201   :  { %v1181_v14 = vadd.f32 %v1180_v23, %v487_v4  ;;  %v2670_v4 = vld [vmem:[#allocation11 + $0x54] ss:$8 sps:$4 sm:$0xff]  }
 0x20a   :  { %v1217_v22 = vpop.f32.mrf.mxu1 }
 0x20b   :  { %v1218_v8 = vadd.f32 %v1217_v22, %v1175_v5  ;;  %v2673_v5 = vld [vmem:[#allocation11 + $0x154] ss:$8 sps:$4 sm:$0xff]  }
 0x20c   :  { %v1219_v44 = vpop.f32.mrf.mxu1 }
 0x20d   :  { %v1220_v11 = vadd.f32 %v1219_v44, %v1177_v6  ;;  %v2668_v6 = vld [vmem:[#allocation11 + $0x50] ss:$8 sps:$4 sm:$0xff]  }
 0x20e   :  { %v1221_v29 = vpop.f32.mrf.mxu1 }
 0x20f   :  { %v1222_v15 = vadd.f32 %v1221_v29, %v1179_v10  ;;  %v1353_v29 = vrot.slane %v1344_v20, %v3124_v25  ;;  %v2679_v10 = vld [vmem:[#allocation11 + $0x144] ss:$8 sps:$4 sm:$0xff]   ;;  %v2697_v20 = vld [vmem:[#allocation11 + $0x114] ss:$8 sps:$4 sm:$0xff]  }
 0x210   :  { %v1223_v36 = vpop.f32.mrf.mxu1 }
 0x211   :  { %v1224_v18 = vadd.f32 %v1223_v36, %v1181_v14  ;;  %v2685_v14 = vld [vmem:[#allocation11 + $0x134] ss:$8 sps:$4 sm:$0xff]  }
 0x23a   :  { %v1260_v26 = vpop.f32.mrf.mxu0 }
 0x23b   :  { %v1261_v43 = vadd.f32 %v1260_v26, %v491_v31 }
 0x23c   :  { %v1262_v30 = vpop.f32.mrf.mxu0 }
 0x23d   :  { %v1263_v45 = vadd.f32 %v1262_v30, %v495_v32 }
 0x23e   :  { %v1264_v42 = vpop.f32.mrf.mxu0 }
 0x23f   :  { %v1265_v51 = vadd.f32 %v1264_v42, %v491_v31 }
 0x240   :  { %v1266_v49 = vpop.f32.mrf.mxu0 }
 0x241   :  { %v1267_v55 = vadd.f32 %v1266_v49, %v495_v32 }
 0x24a   :  { %v1303_v7 = vpop.f32.mrf.mxu1 }
 0x24b   :  { %v1304_v48 = vadd.f32 %v1303_v7, %v1261_v43 }
 0x24c   :  { %v1305_v50 = vpop.f32.mrf.mxu1 }
 0x24d   :  { %v2317_v52 = vmul.f32 -1.442695, %v1304_v48  ;;  %v1306_v53 = vadd.f32 %v1305_v50, %v1263_v45 }
 0x24e   :  { %v1307_v54 = vpop.f32.mrf.mxu1 }
 0x24f   :  { %2768 = vpow2.f32 %v2317_v52  ;;  %v2318_v56 = vmul.f32 -1.442695, %v1306_v53  ;;  %v1308_v60 = vadd.f32 %v1307_v54, %v1265_v51 }
 0x250   :  { %v1309_v47 = vpop.f32.mrf.mxu1 }
 0x251   :  { %2770 = vpow2.f32 %v2318_v56  ;;  %v2319_v24 = vmul.f32 -1.442695, %v1308_v60  ;;  %v1310_v46 = vadd.f32 %v1309_v47, %v1267_v55  ;;  %v2656_v55 = vld [vmem:[#allocation11 + $0x70] ss:$8 sps:$4 sm:$0xff]   ;;  %v2658_v56 = vld [vmem:[#allocation11 + $0x74] ss:$8 sps:$4 sm:$0xff]  }
 0x252   :  { %v2659_v60 = vld [vmem:[#allocation11 + $0x170] ss:$8 sps:$4 sm:$0xff]   ;;  %v2661_v47 = vld [vmem:[#allocation11 + $0x174] ss:$8 sps:$4 sm:$0xff]   ;;  %1890 = vmatprep.subr.bf16.mxu0 %v2658_v56 }
 0x253   :  { %2772 = vpow2.f32 %v2319_v24  ;;  %v2320_v62 = vmul.f32 -1.442695, %v1310_v46  ;;  %v2664_v24 = vld [vmem:[#allocation11 + $0x64] ss:$8 sps:$4 sm:$0xff]   ;;  %1931 = vmatprep.subr.bf16.mxu1 %v2661_v47  ;;  %1891 = vmatpush1.bf16.msra.mxu0 %v2656_v55 }
 0x254   :  { %v2667_v46 = vld [vmem:[#allocation11 + $0x164] ss:$8 sps:$4 sm:$0xff]   ;;  %1932 = vmatpush1.bf16.msra.mxu1 %v2659_v60  ;;  %1892 = vmatprep.subr.bf16.mxu0 %v2664_v24 }
 0x255   :  { %2774 = vpow2.f32 %v2320_v62  ;;  %v2662_v62 = vld [vmem:[#allocation11 + $0x60] ss:$8 sps:$4 sm:$0xff]   ;;  %1933 = vmatprep.subr.bf16.mxu1 %v2667_v46 }
 0x256   :  { %2776 = vtanh.f32 %v1218_v8  ;;  %v2671_v8 = vld [vmem:[#allocation11 + $0x150] ss:$8 sps:$4 sm:$0xff]  }
 0x257   :  { %1893 = vmatpush1.bf16.msra.mxu0 %v2662_v62 }
 0x258   :  { %1934 = vmatpush1.bf16.msra.mxu1 %v2665_v0  ;;  %1894 = vmatprep.subr.bf16.mxu0 %v2670_v4 }
 0x259   :  { %1935 = vmatprep.subr.bf16.mxu1 %v2673_v5 }
 0x25b   :  { %1895 = vmatpush1.bf16.msra.mxu0 %v2668_v6 }
 0x25c   :  { %v2769_v9 = vpop.eup %2768  ;;  %1936 = vmatpush1.bf16.msra.mxu1 %v2671_v8  ;;  %v2718_v8 = vld [vmem:[#allocation11 + $0xd4] ss:$8 sps:$4 sm:$0xff]  }
 0x25d   :  { %v1328_v12 = vadd.f32 1.0, %v2769_v9  ;;  %v2676_v9 = vld [vmem:[#allocation11 + $0x44] ss:$8 sps:$4 sm:$0xff]   ;;  %1937 = vmatprep.subr.bf16.mxu1 %v2679_v10 }
 0x25e   :  { %v2771_v13 = vpop.eup %2770  ;;  %1896 = vmatprep.subr.bf16.mxu0 %v2676_v9  ;;  %v2721_v9 = vld [vmem:[#allocation11 + $0x1d4] ss:$8 sps:$4 sm:$0xff]  }
 0x25f   :  { %2778 = vrcp.f32 %v1328_v12  ;;  %v1329_v16 = vadd.f32 1.0, %v2771_v13  ;;  %v2677_v12 = vld [vmem:[#allocation11 + $0x140] ss:$8 sps:$4 sm:$0xff]   ;;  %v2682_v13 = vld [vmem:[#allocation11 + $0x34] ss:$8 sps:$4 sm:$0xff]  }
 0x260   :  { %v2773_v17 = vpop.eup %2772  ;;  %2780 = vtanh.f32 %v1220_v11  ;;  %v2674_v11 = vld [vmem:[#allocation11 + $0x40] ss:$8 sps:$4 sm:$0xff]   ;;  %1938 = vmatpush1.bf16.msra.mxu1 %v2677_v12  ;;  %v2719_v12 = vld [vmem:[#allocation11 + $0x1d0] ss:$8 sps:$4 sm:$0xff]  }
 0x261   :  { %2782 = vrcp.f32 %v1329_v16  ;;  %v1330_v26 = vadd.f32 1.0, %v2773_v17  ;;  %1897 = vmatpush1.bf16.msra.mxu0 %v2674_v11  ;;  %v2683_v16 = vld [vmem:[#allocation11 + $0x130] ss:$8 sps:$4 sm:$0xff]   ;;  %v2688_v17 = vld [vmem:[#allocation11 + $0x24] ss:$8 sps:$4 sm:$0xff]   ;;  %1939 = vmatprep.subr.bf16.mxu1 %v2685_v14 }
 0x262   :  { %v2775_v30 = vpop.eup %2774  ;;  %2784 = vtanh.f32 %v1222_v15  ;;  %v2680_v15 = vld [vmem:[#allocation11 + $0x30] ss:$8 sps:$4 sm:$0xff]   ;;  %1898 = vmatprep.subr.bf16.mxu0 %v2682_v13  ;;  %v2724_v14 = vld [vmem:[#allocation11 + $0xc4] ss:$8 sps:$4 sm:$0xff]  }
 0x263   :  { %2786 = vrcp.f32 %v1330_v26  ;;  %v1331_v19 = vadd.f32 1.0, %v2775_v30  ;;  %v2777_v21 = vpop.eup %2776  ;;  %v2686_v26 = vld [vmem:[#allocation11 + $0x20] ss:$8 sps:$4 sm:$0xff]   ;;  %v2716_v11 = vld [vmem:[#allocation11 + $0xd0] ss:$8 sps:$4 sm:$0xff]  }
 0x264   :  { %2788 = vtanh.f32 %v1224_v18  ;;  %v2691_v18 = vld [vmem:[#allocation11 + $0x124] ss:$8 sps:$4 sm:$0xff]   ;;  %1940 = vmatpush1.bf16.msra.mxu1 %v2683_v16  ;;  %v2689_v30 = vld [vmem:[#allocation11 + $0x120] ss:$8 sps:$4 sm:$0xff]  }
 0x265   :  { %2790 = vrcp.f32 %v1331_v19  ;;  %1899 = vmatpush1.bf16.msra.mxu0 %v2680_v15  ;;  %v2694_v19 = vld [vmem:[#allocation11 + $0x14] ss:$8 sps:$4 sm:$0xff]   ;;  %1941 = vmatprep.subr.bf16.mxu1 %v2691_v18  ;;  %v2727_v15 = vld [vmem:[#allocation11 + $0x1c4] ss:$8 sps:$4 sm:$0xff]   ;;  %v2725_v18 = vld [vmem:[#allocation11 + $0x1c0] ss:$8 sps:$4 sm:$0xff]  }
 0x266   :  { %1900 = vmatprep.subr.bf16.mxu0 %v2688_v17  ;;  %v2722_v17 = vld [vmem:[#allocation11 + $0xc0] ss:$8 sps:$4 sm:$0xff]  }
 0x268   :  { %1942 = vmatpush1.bf16.msra.mxu1 %v2689_v30  ;;  %v2733_v30 = vld [vmem:[#allocation11 + $0x1b4] ss:$8 sps:$4 sm:$0xff]  }
 0x269   :  { %1901 = vmatpush1.bf16.msra.mxu0 %v2686_v26  ;;  %1943 = vmatprep.subr.bf16.mxu1 %v2697_v20  ;;  %v2730_v26 = vld [vmem:[#allocation11 + $0xb4] ss:$8 sps:$4 sm:$0xff]   ;;  %v2731_v20 = vld [vmem:[#allocation11 + $0x1b0] ss:$8 sps:$4 sm:$0xff]  }
 0x26a   :  { %1902 = vmatprep.subr.bf16.mxu0 %v2694_v19  ;;  %v2728_v19 = vld [vmem:[#allocation11 + $0xb0] ss:$8 sps:$4 sm:$0xff]  }
 0x26c   :  { %v2779_v22 = vpop.eup %2778 }
 0x26d   :  { %v2781_v44 = vpop.eup %2780  ;;  %v1340_v23 = vmul.f32 %v2779_v22, %v2777_v21  ;;  %v2692_v21 = vld [vmem:[#allocation11 + $0x10] ss:$8 sps:$4 sm:$0xff]  }
 0x26e   :  { %v2783_v31 = vpop.eup %2782  ;;  %v2695_v22 = vld [vmem:[#allocation11 + $0x110] ss:$8 sps:$4 sm:$0xff]   ;;  %1903 = vmatpush1.bf16.msra.mxu0 %v2692_v21  ;;  %v2736_v21 = vld [vmem:[#allocation11 + $0xa4] ss:$8 sps:$4 sm:$0xff]  }
 0x26f   :  { %v2785_v32 = vpop.eup %2784  ;;  %v1341_v36 = vmul.f32 %v2783_v31, %v2781_v44  ;;  %v1356_v7 = vmul.f32 %v1349_v28, %v1340_v23  ;;  %v2700_v44 = vld [vmem:[#allocation11 + $0x4] ss:$8 sps:$4 sm:$0xff]   ;;  %1944 = vmatpush1.bf16.msra.mxu1 %v2695_v22  ;;  %v2706_v31 = vld [vmem:[#allocation11 + $0xf4] ss:$8 sps:$4 sm:$0xff]  }
 0x270   :  { %v2787_v42 = vpop.eup %2786  ;;  %v2703_v23 = vld [vmem:[#allocation11 + $0x104] ss:$8 sps:$4 sm:$0xff]   ;;  %1904 = vmatprep.subr.bf16.mxu0 %v2700_v44  ;;  %v2734_v44 = vld [vmem:[#allocation11 + $0xa0] ss:$8 sps:$4 sm:$0xff]  }
 0x271   :  { %v2789_v43 = vpop.eup %2788  ;;  %v1357_v45 = vmul.f32 %v1353_v29, %v1341_v36  ;;  %v1342_v48 = vmul.f32 %v2787_v42, %v2785_v32  ;;  %1945 = vmatprep.subr.bf16.mxu1 %v2703_v23  ;;  %v2709_v32 = vld [vmem:[#allocation11 + $0x1f4] ss:$8 sps:$4 sm:$0xff]   ;;  %v2704_v36 = vld [vmem:[#allocation11 + $0xf0] ss:$8 sps:$4 sm:$0xff]   ;;  %v2739_v22 = vld [vmem:[#allocation11 + $0x1a4] ss:$8 sps:$4 sm:$0xff]  }
 0x272   :  { %v2791_v49 = vpop.eup %2790  ;;  %v2707_v42 = vld [vmem:[#allocation11 + $0x1f0] ss:$8 sps:$4 sm:$0xff]   ;;  %v2737_v23 = vld [vmem:[#allocation11 + $0x1a0] ss:$8 sps:$4 sm:$0xff]  }
 0x273   :  { %v1360_v50 = vadd.f32 %v1357_v45, %v1356_v7  ;;  %v1343_v51 = vmul.f32 %v2791_v49, %v2789_v43  ;;  %v1358_v52 = vmul.f32 %v1349_v28, %v1342_v48  ;;  %v2698_v28 = vld [vmem:[#allocation11] ss:$8 sps:$4 sm:$0xff]   ;;  %v2712_v43 = vld [vmem:[#allocation11 + $0xe4] ss:$8 sps:$4 sm:$0xff]   ;;  %v2321_v49 = vld [vmem:[#allocation2] ss:$0 sm:$0xff] }
 0x274   :  { %1905 = vmatpush1.bf16.msra.mxu0 %v2698_v28  ;;  %v2715_v7 = vld [vmem:[#allocation11 + $0x1e4] ss:$8 sps:$4 sm:$0xff]   ;;  %v2710_v45 = vld [vmem:[#allocation11 + $0xe0] ss:$8 sps:$4 sm:$0xff]   ;;  %v2742_v28 = vld [vmem:[#allocation11 + $0x94] ss:$8 sps:$4 sm:$0xff]  }
 0x275   :  { %1361 = vadd.xlane.f32.xlu0 %v1360_v50  ;;  %v1359_v53 = vmul.f32 %v1353_v29, %v1343_v51  ;;  %v2701_v29 = vld [vmem:[#allocation11 + $0x100] ss:$8 sps:$4 sm:$0xff]   ;;  %1906 = vmatprep.subr.bf16.mxu0 %v2706_v31  ;;  %v2740_v31 = vld [vmem:[#allocation11 + $0x90] ss:$8 sps:$4 sm:$0xff]  }
 0x276   :  { %1946 = vmatpush1.bf16.msra.mxu1 %v2701_v29  ;;  %v2713_v48 = vld [vmem:[#allocation11 + $0x1e0] ss:$8 sps:$4 sm:$0xff]   ;;  %v2745_v29 = vld [vmem:[#allocation11 + $0x194] ss:$8 sps:$4 sm:$0xff]  }
 0x277   :  { %v1363_v54 = vadd.f32 %v1359_v53, %v1358_v52  ;;  %1947 = vmatprep.subr.bf16.mxu1 %v2709_v32  ;;  %v2743_v32 = vld [vmem:[#allocation11 + $0x190] ss:$8 sps:$4 sm:$0xff]  }
 0x278   :  { %1907 = vmatpush2.bf16.msra.mxu0 %v2704_v36  ;;  %v2746_v36 = vld [vmem:[#allocation11 + $0x80] ss:$8 sps:$4 sm:$0xff]  }
 0x279   :  { %1364 = vadd.xlane.f32.xlu0 %v1363_v54  ;;  %1908 = vmatprep.subr.bf16.mxu0 %v2712_v43  ;;  %v2749_v43 = vld [vmem:[#allocation11 + $0x180] ss:$8 sps:$4 sm:$0xff]  }
 0x27a   :  { %1948 = vmatpush2.bf16.msra.mxu1 %v2707_v42  ;;  %v2748_v42 = vld [vmem:[#allocation11 + $0x84] ss:$8 sps:$4 sm:$0xff]  }
 0x27b   :  { %1949 = vmatprep.subr.bf16.mxu1 %v2715_v7  ;;  %v2751_v7 = vld [vmem:[#allocation11 + $0x184] ss:$8 sps:$4 sm:$0xff]  }
 0x27c   :  { %1909 = vmatpush2.bf16.msra.mxu0 %v2710_v45  ;;  %v2752_v45 = vld [vmem:[%s3275_s9 + $0x78] sm:$0xff]  }
 0x27d   :  { %1910 = vmatprep.subr.bf16.mxu0 %v2718_v8 }
 0x27e   :  { %1950 = vmatpush2.bf16.msra.mxu1 %v2713_v48 }
 0x27f   :  { %1951 = vmatprep.subr.bf16.mxu1 %v2721_v9 }
 0x280   :  { %1911 = vmatpush2.bf16.msra.mxu0 %v2716_v11 }
 0x281   :  { %1912 = vmatprep.subr.bf16.mxu0 %v2724_v14 }
 0x282   :  { %1952 = vmatpush2.bf16.msra.mxu1 %v2719_v12 }
 0x283   :  { %1953 = vmatprep.subr.bf16.mxu1 %v2727_v15 }
 0x284   :  { %1913 = vmatpush2.bf16.msra.mxu0 %v2722_v17 }
 0x285   :  { %1914 = vmatprep.subr.bf16.mxu0 %v2730_v26 }
 0x286   :  { %1954 = vmatpush2.bf16.msra.mxu1 %v2725_v18 }
 0x287   :  { %1955 = vmatprep.subr.bf16.mxu1 %v2733_v30 }
 0x288   :  { %1915 = vmatpush2.bf16.msra.mxu0 %v2728_v19 }
 0x289   :  { %1916 = vmatprep.subr.bf16.mxu0 %v2736_v21 }
 0x28a   :  { %1956 = vmatpush2.bf16.msra.mxu1 %v2731_v20 }
 0x28b   :  { %1957 = vmatprep.subr.bf16.mxu1 %v2739_v22 }
 0x28c   :  { %1917 = vmatpush2.bf16.msra.mxu0 %v2734_v44 }
 0x28d   :  { %1918 = vmatprep.subr.bf16.mxu0 %v2742_v28 }
 0x28e   :  { %1958 = vmatpush2.bf16.msra.mxu1 %v2737_v23 }
 0x28f   :  { %1959 = vmatprep.subr.bf16.mxu1 %v2745_v29 }
 0x290   :  { %1919 = vmatpush2.bf16.msra.mxu0 %v2740_v31 }
 0x291   :  { %1920 = vmatprep.subr.bf16.mxu0 %v2748_v42 }
 0x292   :  { %1960 = vmatpush2.bf16.msra.mxu1 %v2743_v32 }
 0x293   :  { %1961 = vmatprep.subr.bf16.mxu1 %v2751_v7 }
 0x294   :  { %1921 = vmatpush2.bf16.msra.mxu0 %v2746_v36 }
 0x295   :  { %2403 = vmatprep.subr.bf16.mxu0 %v2752_v45 }
 0x296   :  { %1962 = vmatpush2.bf16.msra.mxu1 %v2749_v43 }
 0x2fe   :  { %v1362_v50 = vpop.xlane.xlu0 %1361 }
 0x2ff   :  { %v1373_v51 = vadd.f32 %v2321_v49, %v1362_v50 }
 0x301   :  { %v1376_v54 = vsel %vm1375_vm1, %v1373_v51, -inf }
 0x302   :  { %v1365_v52 = vpop.xlane.xlu0 %1364 }
 0x303   :  { %v1374_v53 = vadd.f32 %v2321_v49, %v1365_v52 }
 0x305   :  { %v1377_v55 = vsel %vm1375_vm1, %v1374_v53, -inf }
 0x306   :  { %v1378_v56 = vmax.f32 %v1376_v54, %v1377_v55 }
 0x308   :  { %v1379_v60 = vsub.f32 %v1373_v51, %v1378_v56  ;;  %v1380_v47 = vsub.f32 %v1374_v53, %v1378_v56 }
 0x30a   :  { %v1381_v24 = vmul.f32 1.442695, %v1379_v60  ;;  %v1383_v46 = vmul.f32 1.442695, %v1380_v47 }
 0x30c   :  { %2792 = vpow2.f32 %v1381_v24 }
 0x30d   :  { %2794 = vpow2.f32 %v1383_v46 }
 0x319   :  { %v2793_v62 = vpop.eup %2792 }
 0x31a   :  { %v2795_v0 = vpop.eup %2794  ;;  %v1385_v4 = vsel %vm1375_vm1, %v2793_v62, 0.0 }
 0x31b   :  { %v1386_v5 = vsel %vm1375_vm1, %v2795_v0, 0.0 }
 0x31c   :  { %v1387_v6 = vadd.f32 %v1386_v5, %v1385_v4 }
 0x31e   :  { %2796 = vrcp.f32 %v1387_v6 }
 0x32b   :  { %v2797_v10 = vpop.eup %2796 }
 0x32c   :  { %v1389_v13 = vmul.f32 %v2797_v10, %v2793_v62  ;;  %v1390_v16 = vmul.f32 %v2797_v10, %v2795_v0 }
 0x32e   :  { %1393 = vperm.xlu1 %2438, %v1389_v13  }
 0x332   :  { %1398 = vperm.xlu1 %2438, %v1390_v16  }
 0x3a9   :  { %v1394_v48 = vpop.permute.xlu1 %1393 }
 0x3aa   :  { %v1401_v49 = vmul.f32 %v1394_v48, %v338_v41  ;;  %v1402_v50 = vmul.f32 %v1394_v48, %v339_v39  ;;  %v1403_v51 = vmul.f32 %v1394_v48, %v340_v3  ;;  %v1404_v52 = vmul.f32 %v1394_v48, %v341_v1 }
 0x3ac   :  { %v1409_v53 = vrot.slane %v1401_v49, 4  ;;  %v1415_v54 = vrot.slane %v1402_v50, 4  ;;  %v1421_v55 = vrot.slane %v1403_v51, 4  ;;  %v1427_v56 = vrot.slane %v1404_v52, 4 }
 0x3ad   :  { %v1399_v60 = vpop.permute.xlu1 %1398 }
 0x3ae   :  { %v1410_v47 = vadd.f32 %v1409_v53, %v1401_v49  ;;  %v1416_v24 = vadd.f32 %v1415_v54, %v1402_v50  ;;  %v1422_v46 = vadd.f32 %v1421_v55, %v1403_v51  ;;  %v1428_v62 = vadd.f32 %v1427_v56, %v1404_v52 }
 0x3af   :  { %v1405_v35 = vmul.f32 %v1399_v60, %v342_v38  ;;  %v1406_v33 = vmul.f32 %v1399_v60, %v343_v40  ;;  %v1407_v39 = vmul.f32 %v1399_v60, %v344_v63  ;;  %v1408_v41 = vmul.f32 %v1399_v60, %v345_v2 }
 0x3b0   :  { %v1411_v57 = vrot.slane %v1410_v47, 2  ;;  %v1417_v59 = vrot.slane %v1416_v24, 2  ;;  %v1423_v1 = vrot.slane %v1422_v46, 2  ;;  %v1429_v3 = vrot.slane %v1428_v62, 2 }
 0x3b1   :  { %v1433_v0 = vrot.slane %v1405_v35, 4  ;;  %v1439_v4 = vrot.slane %v1406_v33, 4  ;;  %v1445_v5 = vrot.slane %v1407_v39, 4  ;;  %v1451_v6 = vrot.slane %v1408_v41, 4 }
 0x3b2   :  { %v1412_v8 = vadd.f32 %v1411_v57, %v1410_v47  ;;  %v1418_v34 = vadd.f32 %v1417_v59, %v1416_v24  ;;  %v1424_v38 = vadd.f32 %v1423_v1, %v1422_v46  ;;  %v1430_v9 = vadd.f32 %v1429_v3, %v1428_v62  ;;  %v2753_v1 = vld [vmem:[%s3275_s9 + $0x38] sm:$0xff]   ;;  %v2754_v3 = vld [vmem:[%s3275_s9 + $0x70] sm:$0xff]  }
 0x3b3   :  { %v1434_v37 = vadd.f32 %v1433_v0, %v1405_v35  ;;  %v1440_v40 = vadd.f32 %v1439_v4, %v1406_v33  ;;  %v1446_v10 = vadd.f32 %v1445_v5, %v1407_v39  ;;  %v1452_v58 = vadd.f32 %v1451_v6, %v1408_v41  ;;  %v2755_v0 = vld [vmem:[%s3275_s9 + $0x30] sm:$0xff]   ;;  %v2756_v4 = vld [vmem:[%s3275_s9 + $0x68] sm:$0xff]   ;;  %v2758_v6 = vld [vmem:[%s3275_s9 + $0x60] sm:$0xff]  }
 0x3b4   :  { %v1413_v63 = vrot.slane %v1412_v8, 1  ;;  %v1425_v11 = vrot.slane %v1424_v38, 1  ;;  %v1419_v61 = vrot.slane %v1418_v34, 1  ;;  %v1431_v2 = vrot.slane %v1430_v9, 1  ;;  %v2757_v5 = vld [vmem:[%s3275_s9 + $0x28] sm:$0xff]  }
 0x3b5   :  { %v1435_v12 = vrot.slane %v1434_v37, 2  ;;  %v1441_v13 = vrot.slane %v1440_v40, 2  ;;  %v1447_v14 = vrot.slane %v1446_v10, 2  ;;  %v1453_v15 = vrot.slane %v1452_v58, 2 }
 0x3b6   :  { %v1414_v16 = vadd.f32 %v1413_v63, %v1412_v8  ;;  %v1426_v17 = vadd.f32 %v1425_v11, %v1424_v38  ;;  %v1420_v18 = vadd.f32 %v1419_v61, %v1418_v34  ;;  %v1432_v26 = vadd.f32 %v1431_v2, %v1430_v9  ;;  %v2759_v8 = vld [vmem:[%s3275_s9 + $0x20] sm:$0xff]   ;;  %v2760_v34 = vld [vmem:[%s3275_s9 + $0x58] sm:$0xff]   ;;  %v2762_v9 = vld [vmem:[%s3275_s9 + $0x50] sm:$0xff]  }
 0x3b7   :  { %v1436_v30 = vadd.f32 %v1435_v12, %v1434_v37  ;;  %v1442_v19 = vadd.f32 %v1441_v13, %v1440_v40  ;;  %v1448_v20 = vadd.f32 %v1447_v14, %v1446_v10  ;;  %v1454_v21 = vadd.f32 %v1453_v15, %v1452_v58  ;;  %v2761_v38 = vld [vmem:[%s3275_s9 + $0x18] sm:$0xff]   ;;  %v2763_v37 = vld [vmem:[%s3275_s9 + $0x10] sm:$0xff]   ;;  %v2764_v40 = vld [vmem:[%s3275_s9 + $0x48] sm:$0xff]  }
 0x3b8   :  { %v1457_v29 = vpack.c.bf16 %v1414_v16, %v1414_v16  ;;  %v1459_v31 = vpack.c.bf16 %v1426_v17, %v1426_v17  ;;  %v1458_v32 = vpack.c.bf16 %v1420_v18, %v1420_v18  ;;  %v1460_v36 = vpack.c.bf16 %v1432_v26, %v1432_v26  ;;  %v2765_v10 = vld [vmem:[%s3275_s9 + $0x8] sm:$0xff]   ;;  %v2766_v58 = vld [vmem:[%s3275_s9 + $0x40] sm:$0xff]  }
 0x3b9   :  { %v1437_v22 = vrot.slane %v1436_v30, 1  ;;  %v1443_v44 = vrot.slane %v1442_v19, 1  ;;  %v1449_v23 = vrot.slane %v1448_v20, 1  ;;  %v1455_v28 = vrot.slane %v1454_v21, 1  ;;  %v2767_v63 = vld [vmem:[%s3275_s9] sm:$0xff]   ;;  %s2980_s9 = smov [#allocation15]  }
 0x3ba   :  { %v1550_v52 = vunpack.c.l.b16 %v1458_v32  ;;  %v1552_v53 = vunpack.c.l.b16 %v1460_v36  ;;  %v1549_v54 = vunpack.c.l.b16 %v1457_v29  ;;  %v1551_v55 = vunpack.c.l.b16 %v1459_v31  ;;  %v1529_v11 = vld [vmem:[#allocation12] sm:$0x3]  ;;  %s2159_s20 = sshll.u32 %s2980_s9, 4  ;;  %s2160_s20 = int_to_ptr.vmem [resolvable:$true] %s2159_s20 }
 0x3bb   :  { %v1438_v42 = vadd.f32 %v1437_v22, %v1436_v30  ;;  %v1444_v43 = vadd.f32 %v1443_v44, %v1442_v19  ;;  %v1450_v7 = vadd.f32 %v1449_v23, %v1448_v20  ;;  %v1456_v45 = vadd.f32 %v1455_v28, %v1454_v21  ;;  %s2938_s21 = scalar_lea.vmem %s2160_s20, 32  ;;  %p2943_p8 = scmp.lt.s32.totalorder %s2160_s20, %s2160_s20 }
 0x3bc   :  { %v1534_v61 = vrot.slane %v1529_v11, %v3127_v27  ;;  %v1538_v2 = vrot.slane %v1529_v11, %v3124_v25  ;;  %v2386_v25 = vld [vmem:[#allocation14] ss:$0 sm:$0xff]  ;;  %p2939_p7 = scmp.ne.s32.totalorder %s2160_s20, %s2938_s21  ;;  %p2944_p9 = scmp.lt.s32.totalorder %s2938_s21, %s2938_s21 }
 0x3bd   :  { %v1461_v48 = vpack.c.bf16 %v1438_v42, %v1438_v42  ;;  %v1463_v49 = vpack.c.bf16 %v1450_v7, %v1450_v7  ;;  %v1462_v50 = vpack.c.bf16 %v1444_v43, %v1444_v43  ;;  %v1464_v51 = vpack.c.bf16 %v1456_v45, %v1456_v45 }
 0x3be   :  { %p2945_p10 = por %p2944_p9, %p2943_p8 }
 0x3bf   :  { %v1553_v56 = vunpack.c.l.b16 %v1461_v48  ;;  %v1555_v60 = vunpack.c.l.b16 %v1463_v49  ;;  %v1554_v47 = vunpack.c.l.b16 %v1462_v50  ;;  %v1556_v24 = vunpack.c.l.b16 %v1464_v51 }
 0x3c0   :  { %p2946_p11 = pnand %p2945_p10, %p2939_p7 }
 0x3c1   :  { %v1559_v46 = vsel %vm1557_vm2, %v1554_v47, %v1550_v52  ;;  %v1561_v62 = vsel %vm1557_vm2, %v1556_v24, %v1552_v53  ;;  %v1558_v35 = vsel %vm1557_vm2, %v1553_v56, %v1549_v54  ;;  %v1560_v33 = vsel %vm1557_vm2, %v1555_v60, %v1551_v55 }
 0x3c2   :  { %v1563_v39 = vpack.c.b16 %v1559_v46, %v1559_v46  ;;  %v1565_v41 = vpack.c.b16 %v1561_v62, %v1561_v62  ;;  %v1562_v57 = vpack.c.b16 %v1558_v35, %v1558_v35  ;;  %v1564_v59 = vpack.c.b16 %v1560_v33, %v1560_v33 }
 0x3c4   :  { %1922 = vmatprep.mubr.bf16.mxu0 %v1563_v39  ;;  %1963 = vmatprep.mubr.bf16.mxu1 %v1565_v41 }
 0x3c5   :  { %1923 = vmatmul.mubr.bf16.vlgmr.msra.gmra.mxu0 %v1562_v57  ;;  %1964 = vmatmul.mubr.bf16.vlgmr.msra.gmra.mxu1 %v1564_v59 }
 0x3c6   :  { %2404 = vmatpush3.bf16.msra.mxu0 %v2753_v1 }
 0x3c7   :  { %2405 = vmatprep.subr.bf16.mxu0 %v2754_v3 }
 0x3ca   :  { %2406 = vmatpush3.bf16.msra.mxu0 %v2755_v0 }
 0x3cb   :  { %2407 = vmatprep.subr.bf16.mxu0 %v2756_v4 }
 0x3ce   :  { %2408 = vmatpush3.bf16.msra.mxu0 %v2757_v5 }
 0x3cf   :  { %2409 = vmatprep.subr.bf16.mxu0 %v2758_v6 }
 0x3d2   :  { %2410 = vmatpush3.bf16.msra.mxu0 %v2759_v8 }
 0x3d3   :  { %2411 = vmatprep.subr.bf16.mxu0 %v2760_v34 }
 0x3d6   :  { %2412 = vmatpush3.bf16.msra.mxu0 %v2761_v38 }
 0x3d7   :  { %2413 = vmatprep.subr.bf16.mxu0 %v2762_v9 }
 0x3da   :  { %2414 = vmatpush3.bf16.msra.mxu0 %v2763_v37 }
 0x3db   :  { %2415 = vmatprep.subr.bf16.mxu0 %v2764_v40 }
 0x3de   :  { %2416 = vmatpush3.bf16.msra.mxu0 %v2765_v10 }
 0x3df   :  { %2417 = vmatprep.subr.bf16.mxu0 %v2766_v58 }
 0x3e2   :  { %2418 = vmatpush3.bf16.msra.mxu0 %v2767_v63 }
 0x485   :  { %v1924_v12 = vpop.f32.mrf.mxu0  ;;  %v1965_v13 = vpop.f32.mrf.mxu1 }
 0x486   :  { %v1925_v14 = vadd.f32 %v1924_v12, %v1534_v61 }
 0x487   :  { %v1926_v15 = vpop.f32.mrf.mxu0  ;;  %v1967_v16 = vpop.f32.mrf.mxu1 }
 0x488   :  { %v1966_v17 = vadd.f32 %v1965_v13, %v1925_v14  ;;  %v1927_v18 = vadd.f32 %v1926_v15, %v1538_v2 }
 0x489   :  { %v1928_v26 = vpop.f32.mrf.mxu0  ;;  %v1969_v30 = vpop.f32.mrf.mxu1 }
 0x48a   :  { %v1968_v19 = vadd.f32 %v1967_v16, %v1927_v18  ;;  %v1972_v20 = vmax.f32 %v1966_v17, 0.0 }
 0x48b   :  { %v1929_v21 = vpop.f32.mrf.mxu0  ;;  %v1970_v22 = vpop.f32.mrf.mxu1 }
 0x48c   :  { %v1973_v44 = vmax.f32 %v1968_v19, 0.0  ;;  %v1974_v28 = vpack.c.bf16 %v1972_v20, %v1972_v20 }
 0x48e   :  { %v1975_v23 = vpack.c.bf16 %v1973_v44, %v1973_v44 }
 0x490   :  { %2143 = vmatprep.mubr.bf16.mxu0 %v1975_v23 }
 0x491   :  { %2144 = vmatmul.mubr.bf16.vlgmr.msra.gmra.mxu0 %v1974_v28 }
 0x551   :  { %v2419_v27 = vpop.f32.mrf.mxu0 }
 0x553   :  { %v2420_v29 = vpop.f32.mrf.mxu0 }
 0x554   :  { %v2421_v31 = vadd.f32 %v2420_v29, %v2419_v27 }
 0x555   :  { %v2422_v32 = vpop.f32.mrf.mxu0 }
 0x556   :  { %v2146_v36 = vadd.f32 %v2421_v31, %v2386_v25 }
 0x557   :  { %v2423_v42 = vpop.f32.mrf.mxu0 }
 0x558   :  { %2152 = vst.msk [vmem:[#allocation15] sm:$0x3] %vm2151_vm3, %v2146_v36 }
 0x559   :  { %2949 = shalt.err (!%p2946_p11)
}
 0x55a   :  { %2162 = dma.vmem_to_hbm [thread:$0]  %s2160_s20, 32, %s3277_s11, [#allocation5]  }
 0x55b   :  { %2966 = dma.done.wait [#allocation5], 32  }
 0x55c   :  { %2967 = vsyncadd [#allocation5], 4294967264 }
 0x55d   :  { %2166 = vsyncpa [#allocation4], 1 }
 0x55e   :  { %2167 = vsyncpa [#allocation7], 1 }
 0x55f   :  { %2168 = vsyncpa [#allocation10], 1 }
 0x560   :  { %2169 = vsyncpa [#allocation13], 1 }
 0x561   :  { %2170 = vsyncpa [#allocation5], 1 }

</bundles_post_ra>
